<compile_context>
chip_gen: v7x
topology: tpu7x:2x2x1
jax: 0.10.0
libtpu: 0.0.40
codegen_flags: <defaults>
</compile_context>

<pallas_src>
import functools
import math

import jax
import jax.numpy as jnp
from jax.experimental import pallas as pl
from jax.experimental.pallas import tpu as pltpu

_SQRT_HALF = 0.7071067811865476

# Scoped VMEM request: above the v5e/v6e defaults (16/32 MiB) so whole-layer
# residency fits at real shapes, below v7x's 64 MiB physical so it is legal on
# every generation.
_VMEM_LIMIT_BYTES = 48 * 1024 * 1024


# ---------------------------------------------------------------------------
# In-kernel math helpers (f32)
# ---------------------------------------------------------------------------
def _erf(z):
    # Abramowitz & Stegun 7.1.26 rational approximation (|err| < 1.5e-7); lax.erf
    # has no guaranteed Mosaic lowering. Matches the exact erf GELU well below f32
    # working precision at these activation scales.
    a1, a2, a3, a4, a5 = (0.254829592, -0.284496736, 1.421413741,
                          -1.453152027, 1.061405429)
    p = 0.3275911
    az = jnp.abs(z)
    t = 1.0 / (1.0 + p * az)
    poly = ((((a5 * t + a4) * t + a3) * t + a2) * t + a1) * t
    y = 1.0 - poly * jnp.exp(-az * az)
    return jnp.where(z >= 0.0, y, -y)


def _gelu(x):
    # GELU(x) = x * 0.5 * (1 + erf(x / sqrt(2)))  (exact formulation of the module)
    return x * 0.5 * (1.0 + _erf(x * _SQRT_HALF))


def _layernorm(x, gamma, beta, eps=1e-5):
    # Matches the module's LayerNorm (biased variance, eps=1e-5), all in f32.
    mean = jnp.mean(x, axis=-1, keepdims=True)
    xc = x - mean
    var = jnp.mean(xc * xc, axis=-1, keepdims=True)
    return xc * jax.lax.rsqrt(var + eps) * gamma + beta


# ---------------------------------------------------------------------------
# Kernels
# ---------------------------------------------------------------------------
def _embed_kernel(ids_ref,                       # SMEM (B, S) int32  (scalar prefetch)
                  tok_hbm,                       # HBM  (V, H)        (memory_space=ANY)
                  pos_ref, typ_ref, g_ref, b_ref,  # VMEM blocks
                  out_ref,                       # VMEM (1, S, H)
                  tok_rows, sems):               # scratch: VMEM (S, H), DMA sems (S,)
    b = pl.program_id(0)
    S = out_ref.shape[1]
    # Gather the S token rows with overlapped row DMAs (issue all, then wait all).
    # TODO(synk): switch the static unroll to lax.fori_loop for large S.
    for i in range(S):
        pltpu.make_async_copy(tok_hbm.at[pl.ds(ids_ref[b, i], 1), :],
                              tok_rows.at[pl.ds(i, 1), :],
                              sems.at[i]).start()
    for i in range(S):
        pltpu.make_async_copy(tok_hbm.at[pl.ds(ids_ref[b, i], 1), :],
                              tok_rows.at[pl.ds(i, 1), :],
                              sems.at[i]).wait()
    # position ids are arange(S) (pos block already sliced to rows [0, S));
    # token_type_ids are all zeros -> segment row 0.
    emb = tok_rows[...] + pos_ref[...] + typ_ref[0:1, :]
    # TODO(synk): dropout after the embedding LayerNorm is identity (inference mode).
    out_ref[0] = _layernorm(emb, g_ref[...], b_ref[...]).astype(out_ref.dtype)


def _encoder_kernel(x_ref,
                    wqkv_ref, bqkv_ref, wo_ref, bo_ref,
                    ln1_g_ref, ln1_b_ref,
                    w1_ref, b1_ref, w2_ref, b2_ref,
                    ln2_g_ref, ln2_b_ref,
                    out_ref, x_scr, ctx_scr,
                    *, num_heads, approx_recip):
    l = pl.program_id(1)
    cdt = wqkv_ref.dtype                          # matmul compute dtype (bf16 or f32)

    # Layer 0: pull the embedding activations into the resident VMEM scratch.
    @pl.when(l == 0)
    def _():
        x_scr[...] = x_ref[0]

    x = x_scr[...]                                # (S, H) f32, resident across layers
    H = x.shape[-1]
    hd = H // num_heads
    scale = 1.0 / math.sqrt(hd)

    # Fused QKV projection: one MXU pass with N = 3H (weights pre-fused offline).
    qkv = (jnp.dot(x.astype(cdt), wqkv_ref[0], preferred_element_type=jnp.float32)
           + bqkv_ref[0])
    q = qkv[:, :H].astype(cdt)
    k = qkv[:, H:2 * H].astype(cdt)
    v = qkv[:, 2 * H:].astype(cdt)

    # Per-head attention (statically unrolled). nn.Sequential passes no attn_mask,
    # so there is no mask term. Softmax normalization is deferred to the (S, hd)
    # head output; each head output is stored at its lane offset into ctx_scr so a
    # single K=H output projection can follow.
    for h in range(num_heads):
        sl = slice(h * hd, (h + 1) * hd)
        scores = jax.lax.dot_general(
            q[:, sl], k[:, sl], (((1,), (1,)), ((), ())),
            preferred_element_type=jnp.float32) * scale        # (S, S)
        m = jnp.max(scores, axis=-1, keepdims=True)
        p = jnp.exp(scores - m)
        denom = jnp.sum(p, axis=-1, keepdims=True)
        o_h = jnp.dot(p.astype(cdt), v[:, sl],
                      preferred_element_type=jnp.float32)      # (S, hd)
        ctx_scr[:, sl] = o_h * pl.reciprocal(denom, approx=approx_recip)

    # Output projection with full MXU contraction depth K = H.
    attn_out = (jnp.dot(ctx_scr[...].astype(cdt), wo_ref[0],
                        preferred_element_type=jnp.float32) + bo_ref[0])
    # TODO(synk): dropout before each residual is identity (inference mode).
    h1 = _layernorm(attn_out + x, ln1_g_ref[0], ln1_b_ref[0])

    # MLP: lin1 -> GELU -> lin2 (GELU / LayerNorm / residuals stay f32).
    inter = _gelu(jnp.dot(h1.astype(cdt), w1_ref[0],
                          preferred_element_type=jnp.float32) + b1_ref[0])
    mlp = (jnp.dot(inter.astype(cdt), w2_ref[0],
                   preferred_element_type=jnp.float32) + b2_ref[0])
    x_new = _layernorm(mlp + h1, ln2_g_ref[0], ln2_b_ref[0])

    x_scr[...] = x_new                            # carry to the next layer

    @pl.when(l == pl.num_programs(1) - 1)
    def _():
        out_ref[0] = x_new.astype(out_ref.dtype)


def _heads_kernel(enc_ref, wl_ref, bl_ref, lng_ref, lnb_ref,
                  wu_ref, bu_ref, wc_ref, bc_ref,
                  tkn_ref, cls_ref, h_scr):
    v = pl.program_id(1)
    cdt = wl_ref.dtype

    # Token-head intermediate (lin -> GELU -> LayerNorm) and the classification head
    # are computed once per batch element (first vocab tile) and reused from scratch.
    @pl.when(v == 0)
    def _():
        enc = enc_ref[0]                                       # (S, H) f32
        hh = (jnp.dot(enc.astype(cdt), wl_ref[...],
                      preferred_element_type=jnp.float32) + bl_ref[...])
        h_scr[...] = _layernorm(_gelu(hh), lng_ref[...], lnb_ref[...])
        # Classification head on the CLS (position-0) encoding; dropout is identity.
        cls_in = enc[0:1, :]
        cls_ref[0] = (jnp.dot(cls_in.astype(cdt), wc_ref[...],
                              preferred_element_type=jnp.float32)
                      + bc_ref[...]).astype(cls_ref.dtype)

    # Unembed for this vocab tile (lane-dense (S, TILE_V) store).
    tkn_ref[0] = (jnp.dot(h_scr[...].astype(cdt), wu_ref[...],
                          preferred_element_type=jnp.float32)
                  + bu_ref[...]).astype(tkn_ref.dtype)


# ---------------------------------------------------------------------------
# Wrappers (pallas_call plumbing)
# ---------------------------------------------------------------------------
def bert_embed_pallas(input_ids, p):
    B, S = input_ids.shape
    V, H = p["tok_emb"].shape
    T = p["typ_emb"].shape[0]
    # TODO(synk): nn.Embedding errors on out-of-range ids; we clamp instead (avoids
    # an unchecked OOB DMA).
    ids = jnp.clip(input_ids.astype(jnp.int32), 0, V - 1)
    return pl.pallas_call(
        _embed_kernel,
        out_shape=jax.ShapeDtypeStruct((B, S, H), jnp.float32),
        grid_spec=pltpu.PrefetchScalarGridSpec(
            num_scalar_prefetch=1,
            grid=(B,),
            in_specs=[
                pl.BlockSpec(memory_space=pl.ANY),                  # token table in HBM
                pl.BlockSpec((S, H), lambda b, ids: (0, 0)),        # pos rows [0, S)
                pl.BlockSpec((T, H), lambda b, ids: (0, 0)),        # tiny segment table
                pl.BlockSpec((1, H), lambda b, ids: (0, 0)),        # emb LN gamma
                pl.BlockSpec((1, H), lambda b, ids: (0, 0)),        # emb LN beta
            ],
            out_specs=pl.BlockSpec((1, S, H), lambda b, ids: (b, 0, 0)),
            scratch_shapes=[pltpu.VMEM((S, H), jnp.float32),
                            pltpu.SemaphoreType.DMA((S,))]),
        compiler_params=pltpu.CompilerParams(
            dimension_semantics=("parallel",),
            vmem_limit_bytes=_VMEM_LIMIT_BYTES),
    )(ids, p["tok_emb"], p["pos_emb"], p["typ_emb"], p["emb_ln_g"], p["emb_ln_b"])


def bert_encoder_pallas(x, lw, *, num_heads):
    """All encoder layers in one pallas_call: grid=(B, L), activation resident in
    VMEM scratch across the layer axis, per-layer weights indexed by the layer grid
    coordinate (so the next layer's weight DMA pipelines behind this layer's compute)."""
    B, S, H = x.shape
    L, _, I = lw["w1"].shape
    approx = lw["wqkv"].dtype == jnp.bfloat16     # approx reciprocal on the perf path

    def wspec(d1, d2):
        return pl.BlockSpec((1, d1, d2), lambda b, l: (l, 0, 0))

    kernel = functools.partial(_encoder_kernel, num_heads=num_heads,
                               approx_recip=approx)
    return pl.pallas_call(
        kernel,
        out_shape=jax.ShapeDtypeStruct((B, S, H), jnp.float32),
        grid=(B, L),
        in_specs=[
            pl.BlockSpec((1, S, H), lambda b, l: (b, 0, 0)),   # embeddings (read at l==0)
            wspec(H, 3 * H), wspec(1, 3 * H),                  # fused Wqkv / bqkv
            wspec(H, H), wspec(1, H),                          # Wo / bo
            wspec(1, H), wspec(1, H),                          # ln1 gamma / beta
            wspec(H, I), wspec(1, I),                          # W1 / b1
            wspec(I, H), wspec(1, H),                          # W2 / b2
            wspec(1, H), wspec(1, H),                          # ln2 gamma / beta
        ],
        out_specs=pl.BlockSpec((1, S, H), lambda b, l: (b, 0, 0)),
        scratch_shapes=[pltpu.VMEM((S, H), jnp.float32),       # resident activation
                        pltpu.VMEM((S, H), jnp.float32)],      # attention context
        compiler_params=pltpu.CompilerParams(
            dimension_semantics=("parallel", "arbitrary"),
            vmem_limit_bytes=_VMEM_LIMIT_BYTES),
    )(x, lw["wqkv"], lw["bqkv"], lw["wo"], lw["bo"],
      lw["ln1_g"], lw["ln1_b"], lw["w1"], lw["b1"],
      lw["w2"], lw["b2"], lw["ln2_g"], lw["ln2_b"])


def bert_heads_pallas(enc, p, *, tile_v=2048):
    B, S, H = enc.shape
    V = p["unembed_w"].shape[1]
    C = p["cls_w"].shape[1]
    tv = V if V <= tile_v else tile_v
    # TODO(synk): pad the vocab to a multiple of tile_v at real (30K) vocab sizes.
    assert V % tv == 0
    nv = V // tv
    tkn, cls = pl.pallas_call(
        _heads_kernel,
        out_shape=(jax.ShapeDtypeStruct((B, S, V), jnp.float32),
                   jax.ShapeDtypeStruct((B, 1, C), jnp.float32)),
        grid=(B, nv),
        in_specs=[
            pl.BlockSpec((1, S, H), lambda b, v: (b, 0, 0)),   # encodings
            pl.BlockSpec((H, H), lambda b, v: (0, 0)),         # lin
            pl.BlockSpec((1, H), lambda b, v: (0, 0)),
            pl.BlockSpec((1, H), lambda b, v: (0, 0)),         # final LayerNorm
            pl.BlockSpec((1, H), lambda b, v: (0, 0)),
            pl.BlockSpec((H, tv), lambda b, v: (0, v)),        # unembed (vocab tiled)
            pl.BlockSpec((1, tv), lambda b, v: (0, v)),
            pl.BlockSpec((H, C), lambda b, v: (0, 0)),         # classification head
            pl.BlockSpec((1, C), lambda b, v: (0, 0)),
        ],
        out_specs=(pl.BlockSpec((1, S, tv), lambda b, v: (b, 0, v)),
                   pl.BlockSpec((1, 1, C), lambda b, v: (b, 0, 0))),
        scratch_shapes=[pltpu.VMEM((S, H), jnp.float32)],
        compiler_params=pltpu.CompilerParams(
            dimension_semantics=("parallel", "arbitrary"),
            vmem_limit_bytes=_VMEM_LIMIT_BYTES),
    )(enc, p["lin_w"], p["lin_b"], p["ln_g"], p["ln_b"],
      p["unembed_w"], p["unembed_b"], p["cls_w"], p["cls_b"])
    return tkn, cls[:, 0, :]


def bert_with_classify_pallas(input_ids, prepped, *, num_heads):
    x = bert_embed_pallas(input_ids, prepped)
    enc = bert_encoder_pallas(x, prepped["layers"], num_heads=num_heads)
    return bert_heads_pallas(enc, prepped)


# ---------------------------------------------------------------------------
# One-time parameter preprocessing (outside the per-step jit):
#   - fuse Wq/Wk/Wv (and biases) into a single (H, 3H) / (1, 3H) per layer,
#   - stack all per-layer tensors along a leading L axis,
#   - cast the matmul weight matrices to the compute dtype (bf16 on the perf path);
#     biases, LayerNorm params and embedding tables stay f32.
# ---------------------------------------------------------------------------
def prepare_params(params, compute_dtype=jnp.bfloat16):
    cd = compute_dtype

    def stack(name):
        return jnp.stack([lp[name] for lp in params["layers"]], axis=0)

    layers = {
        "wqkv": jnp.stack([jnp.concatenate([lp["wq"], lp["wk"], lp["wv"]], axis=1)
                           for lp in params["layers"]], axis=0).astype(cd),
        "bqkv": jnp.stack([jnp.concatenate([lp["bq"], lp["bk"], lp["bv"]], axis=1)
                           for lp in params["layers"]], axis=0),
        "wo": stack("wo").astype(cd), "bo": stack("bo"),
        "ln1_g": stack("ln1_g"), "ln1_b": stack("ln1_b"),
        "w1": stack("w1").astype(cd), "b1": stack("b1"),
        "w2": stack("w2").astype(cd), "b2": stack("b2"),
        "ln2_g": stack("ln2_g"), "ln2_b": stack("ln2_b"),
    }
    return {
        "tok_emb": params["tok_emb"], "pos_emb": params["pos_emb"],
        "typ_emb": params["typ_emb"],
        "emb_ln_g": params["emb_ln_g"], "emb_ln_b": params["emb_ln_b"],
        "lin_w": params["lin_w"].astype(cd), "lin_b": params["lin_b"],
        "ln_g": params["ln_g"], "ln_b": params["ln_b"],
        "unembed_w": params["unembed_w"].astype(cd), "unembed_b": params["unembed_b"],
        "cls_w": params["cls_w"].astype(cd), "cls_b": params["cls_b"],
        "layers": layers,
    }


# ---------------------------------------------------------------------------
# Pure-JAX reference (matches the PyTorch module's math; exact erf GELU)
# ---------------------------------------------------------------------------
def bert_reference(input_ids, params, *, num_heads):
    with jax.default_matmul_precision("highest"):
        B, S = input_ids.shape
        H = params["tok_emb"].shape[1]
        hd = H // num_heads

        def layernorm(x, g, b):
            m = x.mean(-1, keepdims=True)
            v = ((x - m) ** 2).mean(-1, keepdims=True)
            return (x - m) * g[0] / jnp.sqrt(v + 1e-5) + b[0]

        def gelu(x):
            return x * 0.5 * (1.0 + jax.scipy.special.erf(x * _SQRT_HALF))

        emb = (params["tok_emb"][input_ids]
               + params["pos_emb"][jnp.arange(S)][None, :, :]
               + params["typ_emb"][jnp.zeros((B, S), jnp.int32)])
        x = layernorm(emb, params["emb_ln_g"], params["emb_ln_b"])

        for lp in params["layers"]:
            q = x @ lp["wq"] + lp["bq"][0]
            k = x @ lp["wk"] + lp["bk"][0]
            v = x @ lp["wv"] + lp["bv"][0]
            split = lambda t: t.reshape(B, S, num_heads, hd).transpose(0, 2, 1, 3)
            Q, K, V = split(q), split(k), split(v)
            attn = jnp.einsum("bhsd,bhjd->bhsj", Q, K) / jnp.sqrt(jnp.float32(hd))
            attn = jax.nn.softmax(attn, axis=-1)
            heads = jnp.einsum("bhsj,bhjd->bhsd", attn, V)
            multi = heads.transpose(0, 2, 1, 3).reshape(B, S, H)
            y = multi @ lp["wo"] + lp["bo"][0]
            h1 = layernorm(y + x, lp["ln1_g"], lp["ln1_b"])
            m = gelu(h1 @ lp["w1"] + lp["b1"][0]) @ lp["w2"] + lp["b2"][0]
            x = layernorm(m + h1, lp["ln2_g"], lp["ln2_b"])

        h = layernorm(gelu(x @ params["lin_w"] + params["lin_b"][0]),
                      params["ln_g"], params["ln_b"])
        tkn = h @ params["unembed_w"] + params["unembed_b"][0]
        cls = x[:, 0] @ params["cls_w"] + params["cls_b"][0]
        return tkn, cls


# ---------------------------------------------------------------------------
# Params
# ---------------------------------------------------------------------------
def init_params(key, *, vocab_size, hidden_size, max_position_embeddings,
                type_vocab_size, intermediate_size, num_layers, num_classes):
    keys = iter(jax.random.split(key, 64))

    def nrm(shape, scale=0.05):
        return (scale * jax.random.normal(next(keys), shape)).astype(jnp.float32)

    ones = lambda: jnp.ones((1, hidden_size), jnp.float32)
    zeros = lambda: jnp.zeros((1, hidden_size), jnp.float32)

    params = {
        "tok_emb": nrm((vocab_size, hidden_size), 1.0),
        "pos_emb": nrm((max_position_embeddings, hidden_size), 1.0),
        "typ_emb": nrm((type_vocab_size, hidden_size), 1.0),
        "emb_ln_g": ones(), "emb_ln_b": zeros(),
        "lin_w": nrm((hidden_size, hidden_size)), "lin_b": nrm((1, hidden_size)),
        "ln_g": ones(), "ln_b": zeros(),
        "unembed_w": nrm((hidden_size, vocab_size)), "unembed_b": nrm((1, vocab_size)),
        "cls_w": nrm((hidden_size, num_classes)), "cls_b": nrm((1, num_classes)),
        "layers": [],
    }
    for _ in range(num_layers):
        params["layers"].append({
            "wq": nrm((hidden_size, hidden_size)), "bq": nrm((1, hidden_size)),
            "wk": nrm((hidden_size, hidden_size)), "bk": nrm((1, hidden_size)),
            "wv": nrm((hidden_size, hidden_size)), "bv": nrm((1, hidden_size)),
            "wo": nrm((hidden_size, hidden_size)), "bo": nrm((1, hidden_size)),
            "ln1_g": ones(), "ln1_b": zeros(),
            "w1": nrm((hidden_size, intermediate_size)),
            "b1": nrm((1, intermediate_size)),
            "w2": nrm((intermediate_size, hidden_size)),
            "b2": nrm((1, hidden_size)),
            "ln2_g": ones(), "ln2_b": zeros(),
        })
    return params


if __name__ == "__main__":
    batch, seq = 2, 8
    vocab_size, hidden_size = 64, 32
    max_position_embeddings, type_vocab_size = 16, 2
    intermediate_size, num_heads, num_layers, num_classes = 64, 4, 2, 4

    root = jax.random.PRNGKey(0)
    k_ids, k_params = jax.random.split(root)
    input_ids = jax.random.randint(k_ids, (batch, seq), 0, vocab_size, dtype=jnp.int32)
    params = init_params(
        k_params, vocab_size=vocab_size, hidden_size=hidden_size,
        max_position_embeddings=max_position_embeddings,
        type_vocab_size=type_vocab_size, intermediate_size=intermediate_size,
        num_layers=num_layers, num_classes=num_classes)

    tkn_expect, cls_expect = bert_reference(input_ids, params, num_heads=num_heads)

    fwd = jax.jit(functools.partial(bert_with_classify_pallas, num_heads=num_heads))

    # Exact-numerics path: f32 matmul inputs, must match the module's math tightly.
    tkn32, cls32 = fwd(input_ids, prepare_params(params, compute_dtype=jnp.float32))
    tkn32, cls32 = jax.block_until_ready((tkn32, cls32))
    assert tkn32.shape == (batch, seq, vocab_size)
    assert cls32.shape == (batch, num_classes)
    assert jnp.allclose(tkn32, tkn_expect, rtol=2e-3, atol=2e-3), "f32 token logits mismatch"
    assert jnp.allclose(cls32, cls_expect, rtol=2e-3, atol=2e-3), "f32 cls logits mismatch"

    # Performance path: bf16 matmul inputs with f32 accumulation (LayerNorm/softmax/
    # residuals stay f32); looser tolerance only accounts for bf16 input rounding.
    tkn16, cls16 = fwd(input_ids, prepare_params(params, compute_dtype=jnp.bfloat16))
    tkn16, cls16 = jax.block_until_ready((tkn16, cls16))
    assert jnp.allclose(tkn16, tkn_expect, rtol=3e-2, atol=3e-2), "bf16 token logits mismatch"
    assert jnp.allclose(cls16, cls_expect, rtol=3e-2, atol=3e-2), "bf16 cls logits mismatch"

    print("KERNEL_OK")
</pallas_src>

<mosaic_0001>
module attributes {stable_mosaic.version = 11 : i64} {
  func.func @_embed_kernel(%arg0: i32, %arg1: memref<2x8xi32, #tpu.memory_space<smem>>, %arg2: memref<64x32xf32, #tpu.memory_space<any>>, %arg3: memref<8x32xf32, #tpu.memory_space<vmem>>, %arg4: memref<2x32xf32, #tpu.memory_space<vmem>>, %arg5: memref<1x32xf32, #tpu.memory_space<vmem>>, %arg6: memref<1x32xf32, #tpu.memory_space<vmem>>, %arg7: memref<1x8x32xf32, #tpu.memory_space<vmem>>, %arg8: memref<8x32xf32, #tpu.memory_space<vmem>>, %arg9: memref<8x!tpu.dma_semaphore, #tpu.memory_space<semaphore_mem>>) attributes {dimension_semantics = [#tpu.dimension_semantics<parallel>], iteration_bounds = array<i64: 2>, scalar_prefetch = 1 : i64, scratch_operands = 2 : i64, tpu.core_type = #tpu.core_type<tc>, window_params = [{}, {transform_indices = @transform_1, window_bounds = array<i64: 8, 32>}, {pipeline_mode = #tpu.pipeline_mode<synchronous>, transform_indices = @transform_2, window_bounds = array<i64: 2, 32>}, {pipeline_mode = #tpu.pipeline_mode<synchronous>, transform_indices = @transform_3, window_bounds = array<i64: 1, 32>}, {pipeline_mode = #tpu.pipeline_mode<synchronous>, transform_indices = @transform_4, window_bounds = array<i64: 1, 32>}, {transform_indices = @transform_5, window_bounds = array<i64: 1, 8, 32>}]} {
    %0 = arith.index_cast %arg0 : i32 to index
    %c0 = arith.constant 0 : index
    %1 = memref.load %arg1[%0, %c0] : memref<2x8xi32, #tpu.memory_space<smem>>
    %c0_i32 = arith.constant 0 : i32
    %c0_i32_0 = arith.constant 0 : i32
    %2 = tpu.memref_slice %arg2[%1, %c0_i32_0] : memref<64x32xf32, #tpu.memory_space<any>> -> memref<1x32xf32, #tpu.memory_space<any>>
    %c0_i32_1 = arith.constant 0 : i32
    %c0_i32_2 = arith.constant 0 : i32
    %3 = tpu.memref_slice %arg8[%c0_i32_1, %c0_i32_2] : memref<8x32xf32, #tpu.memory_space<vmem>> -> memref<1x32xf32, #tpu.memory_space<vmem>>
    %4 = tpu.memref_slice %arg9[%c0_i32] : memref<8x!tpu.dma_semaphore, #tpu.memory_space<semaphore_mem>> -> memref<1x!tpu.dma_semaphore, #tpu.memory_space<semaphore_mem>>
    %5 = tpu.memref_squeeze %4 : memref<1x!tpu.dma_semaphore, #tpu.memory_space<semaphore_mem>> -> memref<!tpu.dma_semaphore, #tpu.memory_space<semaphore_mem>>
    tpu.enqueue_dma source(%2 : memref<1x32xf32, #tpu.memory_space<any>>) target(%3 : memref<1x32xf32, #tpu.memory_space<vmem>>) target_semaphore(%5 : memref<!tpu.dma_semaphore, #tpu.memory_space<semaphore_mem>>)
    %6 = arith.index_cast %arg0 : i32 to index
    %c1 = arith.constant 1 : index
    %7 = memref.load %arg1[%6, %c1] : memref<2x8xi32, #tpu.memory_space<smem>>
    %c1_i32 = arith.constant 1 : i32
    %c0_i32_3 = arith.constant 0 : i32
    %8 = tpu.memref_slice %arg2[%7, %c0_i32_3] : memref<64x32xf32, #tpu.memory_space<any>> -> memref<1x32xf32, #tpu.memory_space<any>>
    %c1_i32_4 = arith.constant 1 : i32
    %c0_i32_5 = arith.constant 0 : i32
    %9 = tpu.memref_slice %arg8[%c1_i32_4, %c0_i32_5] : memref<8x32xf32, #tpu.memory_space<vmem>> -> memref<1x32xf32, #tpu.memory_space<vmem>>
    %10 = tpu.memref_slice %arg9[%c1_i32] : memref<8x!tpu.dma_semaphore, #tpu.memory_space<semaphore_mem>> -> memref<1x!tpu.dma_semaphore, #tpu.memory_space<semaphore_mem>>
    %11 = tpu.memref_squeeze %10 : memref<1x!tpu.dma_semaphore, #tpu.memory_space<semaphore_mem>> -> memref<!tpu.dma_semaphore, #tpu.memory_space<semaphore_mem>>
    tpu.enqueue_dma source(%8 : memref<1x32xf32, #tpu.memory_space<any>>) target(%9 : memref<1x32xf32, #tpu.memory_space<vmem>>) target_semaphore(%11 : memref<!tpu.dma_semaphore, #tpu.memory_space<semaphore_mem>>)
    %12 = arith.index_cast %arg0 : i32 to index
    %c2 = arith.constant 2 : index
    %13 = memref.load %arg1[%12, %c2] : memref<2x8xi32, #tpu.memory_space<smem>>
    %c2_i32 = arith.constant 2 : i32
    %c0_i32_6 = arith.constant 0 : i32
    %14 = tpu.memref_slice %arg2[%13, %c0_i32_6] : memref<64x32xf32, #tpu.memory_space<any>> -> memref<1x32xf32, #tpu.memory_space<any>>
    %c2_i32_7 = arith.constant 2 : i32
    %c0_i32_8 = arith.constant 0 : i32
    %15 = tpu.memref_slice %arg8[%c2_i32_7, %c0_i32_8] : memref<8x32xf32, #tpu.memory_space<vmem>> -> memref<1x32xf32, #tpu.memory_space<vmem>>
    %16 = tpu.memref_slice %arg9[%c2_i32] : memref<8x!tpu.dma_semaphore, #tpu.memory_space<semaphore_mem>> -> memref<1x!tpu.dma_semaphore, #tpu.memory_space<semaphore_mem>>
    %17 = tpu.memref_squeeze %16 : memref<1x!tpu.dma_semaphore, #tpu.memory_space<semaphore_mem>> -> memref<!tpu.dma_semaphore, #tpu.memory_space<semaphore_mem>>
    tpu.enqueue_dma source(%14 : memref<1x32xf32, #tpu.memory_space<any>>) target(%15 : memref<1x32xf32, #tpu.memory_space<vmem>>) target_semaphore(%17 : memref<!tpu.dma_semaphore, #tpu.memory_space<semaphore_mem>>)
    %18 = arith.index_cast %arg0 : i32 to index
    %c3 = arith.constant 3 : index
    %19 = memref.load %arg1[%18, %c3] : memref<2x8xi32, #tpu.memory_space<smem>>
    %c3_i32 = arith.constant 3 : i32
    %c0_i32_9 = arith.constant 0 : i32
    %20 = tpu.memref_slice %arg2[%19, %c0_i32_9] : memref<64x32xf32, #tpu.memory_space<any>> -> memref<1x32xf32, #tpu.memory_space<any>>
    %c3_i32_10 = arith.constant 3 : i32
    %c0_i32_11 = arith.constant 0 : i32
    %21 = tpu.memref_slice %arg8[%c3_i32_10, %c0_i32_11] : memref<8x32xf32, #tpu.memory_space<vmem>> -> memref<1x32xf32, #tpu.memory_space<vmem>>
    %22 = tpu.memref_slice %arg9[%c3_i32] : memref<8x!tpu.dma_semaphore, #tpu.memory_space<semaphore_mem>> -> memref<1x!tpu.dma_semaphore, #tpu.memory_space<semaphore_mem>>
    %23 = tpu.memref_squeeze %22 : memref<1x!tpu.dma_semaphore, #tpu.memory_space<semaphore_mem>> -> memref<!tpu.dma_semaphore, #tpu.memory_space<semaphore_mem>>
    tpu.enqueue_dma source(%20 : memref<1x32xf32, #tpu.memory_space<any>>) target(%21 : memref<1x32xf32, #tpu.memory_space<vmem>>) target_semaphore(%23 : memref<!tpu.dma_semaphore, #tpu.memory_space<semaphore_mem>>)
    %24 = arith.index_cast %arg0 : i32 to index
    %c4 = arith.constant 4 : index
    %25 = memref.load %arg1[%24, %c4] : memref<2x8xi32, #tpu.memory_space<smem>>
    %c4_i32 = arith.constant 4 : i32
    %c0_i32_12 = arith.constant 0 : i32
    %26 = tpu.memref_slice %arg2[%25, %c0_i32_12] : memref<64x32xf32, #tpu.memory_space<any>> -> memref<1x32xf32, #tpu.memory_space<any>>
    %c4_i32_13 = arith.constant 4 : i32
    %c0_i32_14 = arith.constant 0 : i32
    %27 = tpu.memref_slice %arg8[%c4_i32_13, %c0_i32_14] : memref<8x32xf32, #tpu.memory_space<vmem>> -> memref<1x32xf32, #tpu.memory_space<vmem>>
    %28 = tpu.memref_slice %arg9[%c4_i32] : memref<8x!tpu.dma_semaphore, #tpu.memory_space<semaphore_mem>> -> memref<1x!tpu.dma_semaphore, #tpu.memory_space<semaphore_mem>>
    %29 = tpu.memref_squeeze %28 : memref<1x!tpu.dma_semaphore, #tpu.memory_space<semaphore_mem>> -> memref<!tpu.dma_semaphore, #tpu.memory_space<semaphore_mem>>
    tpu.enqueue_dma source(%26 : memref<1x32xf32, #tpu.memory_space<any>>) target(%27 : memref<1x32xf32, #tpu.memory_space<vmem>>) target_semaphore(%29 : memref<!tpu.dma_semaphore, #tpu.memory_space<semaphore_mem>>)
    %30 = arith.index_cast %arg0 : i32 to index
    %c5 = arith.constant 5 : index
    %31 = memref.load %arg1[%30, %c5] : memref<2x8xi32, #tpu.memory_space<smem>>
    %c5_i32 = arith.constant 5 : i32
    %c0_i32_15 = arith.constant 0 : i32
    %32 = tpu.memref_slice %arg2[%31, %c0_i32_15] : memref<64x32xf32, #tpu.memory_space<any>> -> memref<1x32xf32, #tpu.memory_space<any>>
    %c5_i32_16 = arith.constant 5 : i32
    %c0_i32_17 = arith.constant 0 : i32
    %33 = tpu.memref_slice %arg8[%c5_i32_16, %c0_i32_17] : memref<8x32xf32, #tpu.memory_space<vmem>> -> memref<1x32xf32, #tpu.memory_space<vmem>>
    %34 = tpu.memref_slice %arg9[%c5_i32] : memref<8x!tpu.dma_semaphore, #tpu.memory_space<semaphore_mem>> -> memref<1x!tpu.dma_semaphore, #tpu.memory_space<semaphore_mem>>
    %35 = tpu.memref_squeeze %34 : memref<1x!tpu.dma_semaphore, #tpu.memory_space<semaphore_mem>> -> memref<!tpu.dma_semaphore, #tpu.memory_space<semaphore_mem>>
    tpu.enqueue_dma source(%32 : memref<1x32xf32, #tpu.memory_space<any>>) target(%33 : memref<1x32xf32, #tpu.memory_space<vmem>>) target_semaphore(%35 : memref<!tpu.dma_semaphore, #tpu.memory_space<semaphore_mem>>)
    %36 = arith.index_cast %arg0 : i32 to index
    %c6 = arith.constant 6 : index
    %37 = memref.load %arg1[%36, %c6] : memref<2x8xi32, #tpu.memory_space<smem>>
    %c6_i32 = arith.constant 6 : i32
    %c0_i32_18 = arith.constant 0 : i32
    %38 = tpu.memref_slice %arg2[%37, %c0_i32_18] : memref<64x32xf32, #tpu.memory_space<any>> -> memref<1x32xf32, #tpu.memory_space<any>>
    %c6_i32_19 = arith.constant 6 : i32
    %c0_i32_20 = arith.constant 0 : i32
    %39 = tpu.memref_slice %arg8[%c6_i32_19, %c0_i32_20] : memref<8x32xf32, #tpu.memory_space<vmem>> -> memref<1x32xf32, #tpu.memory_space<vmem>>
    %40 = tpu.memref_slice %arg9[%c6_i32] : memref<8x!tpu.dma_semaphore, #tpu.memory_space<semaphore_mem>> -> memref<1x!tpu.dma_semaphore, #tpu.memory_space<semaphore_mem>>
    %41 = tpu.memref_squeeze %40 : memref<1x!tpu.dma_semaphore, #tpu.memory_space<semaphore_mem>> -> memref<!tpu.dma_semaphore, #tpu.memory_space<semaphore_mem>>
    tpu.enqueue_dma source(%38 : memref<1x32xf32, #tpu.memory_space<any>>) target(%39 : memref<1x32xf32, #tpu.memory_space<vmem>>) target_semaphore(%41 : memref<!tpu.dma_semaphore, #tpu.memory_space<semaphore_mem>>)
    %42 = arith.index_cast %arg0 : i32 to index
    %c7 = arith.constant 7 : index
    %43 = memref.load %arg1[%42, %c7] : memref<2x8xi32, #tpu.memory_space<smem>>
    %c7_i32 = arith.constant 7 : i32
    %c0_i32_21 = arith.constant 0 : i32
    %44 = tpu.memref_slice %arg2[%43, %c0_i32_21] : memref<64x32xf32, #tpu.memory_space<any>> -> memref<1x32xf32, #tpu.memory_space<any>>
    %c7_i32_22 = arith.constant 7 : i32
    %c0_i32_23 = arith.constant 0 : i32
    %45 = tpu.memref_slice %arg8[%c7_i32_22, %c0_i32_23] : memref<8x32xf32, #tpu.memory_space<vmem>> -> memref<1x32xf32, #tpu.memory_space<vmem>>
    %46 = tpu.memref_slice %arg9[%c7_i32] : memref<8x!tpu.dma_semaphore, #tpu.memory_space<semaphore_mem>> -> memref<1x!tpu.dma_semaphore, #tpu.memory_space<semaphore_mem>>
    %47 = tpu.memref_squeeze %46 : memref<1x!tpu.dma_semaphore, #tpu.memory_space<semaphore_mem>> -> memref<!tpu.dma_semaphore, #tpu.memory_space<semaphore_mem>>
    tpu.enqueue_dma source(%44 : memref<1x32xf32, #tpu.memory_space<any>>) target(%45 : memref<1x32xf32, #tpu.memory_space<vmem>>) target_semaphore(%47 : memref<!tpu.dma_semaphore, #tpu.memory_space<semaphore_mem>>)
    %48 = arith.index_cast %arg0 : i32 to index
    %c0_24 = arith.constant 0 : index
    %49 = memref.load %arg1[%48, %c0_24] : memref<2x8xi32, #tpu.memory_space<smem>>
    %c0_i32_25 = arith.constant 0 : i32
    %c0_i32_26 = arith.constant 0 : i32
    %50 = tpu.memref_slice %arg2[%49, %c0_i32_26] : memref<64x32xf32, #tpu.memory_space<any>> -> memref<1x32xf32, #tpu.memory_space<any>>
    %c0_i32_27 = arith.constant 0 : i32
    %c0_i32_28 = arith.constant 0 : i32
    %51 = tpu.memref_slice %arg8[%c0_i32_27, %c0_i32_28] : memref<8x32xf32, #tpu.memory_space<vmem>> -> memref<1x32xf32, #tpu.memory_space<vmem>>
    %52 = tpu.memref_slice %arg9[%c0_i32_25] : memref<8x!tpu.dma_semaphore, #tpu.memory_space<semaphore_mem>> -> memref<1x!tpu.dma_semaphore, #tpu.memory_space<semaphore_mem>>
    %53 = tpu.memref_squeeze %52 : memref<1x!tpu.dma_semaphore, #tpu.memory_space<semaphore_mem>> -> memref<!tpu.dma_semaphore, #tpu.memory_space<semaphore_mem>>
    tpu.wait_dma2 semaphore(%53 : memref<!tpu.dma_semaphore, #tpu.memory_space<semaphore_mem>>) src(%50 : memref<1x32xf32, #tpu.memory_space<any>>) dst(%51 : memref<1x32xf32, #tpu.memory_space<vmem>>)
    %54 = arith.index_cast %arg0 : i32 to index
    %c1_29 = arith.constant 1 : index
    %55 = memref.load %arg1[%54, %c1_29] : memref<2x8xi32, #tpu.memory_space<smem>>
    %c1_i32_30 = arith.constant 1 : i32
    %c0_i32_31 = arith.constant 0 : i32
    %56 = tpu.memref_slice %arg2[%55, %c0_i32_31] : memref<64x32xf32, #tpu.memory_space<any>> -> memref<1x32xf32, #tpu.memory_space<any>>
    %c1_i32_32 = arith.constant 1 : i32
    %c0_i32_33 = arith.constant 0 : i32
    %57 = tpu.memref_slice %arg8[%c1_i32_32, %c0_i32_33] : memref<8x32xf32, #tpu.memory_space<vmem>> -> memref<1x32xf32, #tpu.memory_space<vmem>>
    %58 = tpu.memref_slice %arg9[%c1_i32_30] : memref<8x!tpu.dma_semaphore, #tpu.memory_space<semaphore_mem>> -> memref<1x!tpu.dma_semaphore, #tpu.memory_space<semaphore_mem>>
    %59 = tpu.memref_squeeze %58 : memref<1x!tpu.dma_semaphore, #tpu.memory_space<semaphore_mem>> -> memref<!tpu.dma_semaphore, #tpu.memory_space<semaphore_mem>>
    tpu.wait_dma2 semaphore(%59 : memref<!tpu.dma_semaphore, #tpu.memory_space<semaphore_mem>>) src(%56 : memref<1x32xf32, #tpu.memory_space<any>>) dst(%57 : memref<1x32xf32, #tpu.memory_space<vmem>>)
    %60 = arith.index_cast %arg0 : i32 to index
    %c2_34 = arith.constant 2 : index
    %61 = memref.load %arg1[%60, %c2_34] : memref<2x8xi32, #tpu.memory_space<smem>>
    %c2_i32_35 = arith.constant 2 : i32
    %c0_i32_36 = arith.constant 0 : i32
    %62 = tpu.memref_slice %arg2[%61, %c0_i32_36] : memref<64x32xf32, #tpu.memory_space<any>> -> memref<1x32xf32, #tpu.memory_space<any>>
    %c2_i32_37 = arith.constant 2 : i32
    %c0_i32_38 = arith.constant 0 : i32
    %63 = tpu.memref_slice %arg8[%c2_i32_37, %c0_i32_38] : memref<8x32xf32, #tpu.memory_space<vmem>> -> memref<1x32xf32, #tpu.memory_space<vmem>>
    %64 = tpu.memref_slice %arg9[%c2_i32_35] : memref<8x!tpu.dma_semaphore, #tpu.memory_space<semaphore_mem>> -> memref<1x!tpu.dma_semaphore, #tpu.memory_space<semaphore_mem>>
    %65 = tpu.memref_squeeze %64 : memref<1x!tpu.dma_semaphore, #tpu.memory_space<semaphore_mem>> -> memref<!tpu.dma_semaphore, #tpu.memory_space<semaphore_mem>>
    tpu.wait_dma2 semaphore(%65 : memref<!tpu.dma_semaphore, #tpu.memory_space<semaphore_mem>>) src(%62 : memref<1x32xf32, #tpu.memory_space<any>>) dst(%63 : memref<1x32xf32, #tpu.memory_space<vmem>>)
    %66 = arith.index_cast %arg0 : i32 to index
    %c3_39 = arith.constant 3 : index
    %67 = memref.load %arg1[%66, %c3_39] : memref<2x8xi32, #tpu.memory_space<smem>>
    %c3_i32_40 = arith.constant 3 : i32
    %c0_i32_41 = arith.constant 0 : i32
    %68 = tpu.memref_slice %arg2[%67, %c0_i32_41] : memref<64x32xf32, #tpu.memory_space<any>> -> memref<1x32xf32, #tpu.memory_space<any>>
    %c3_i32_42 = arith.constant 3 : i32
    %c0_i32_43 = arith.constant 0 : i32
    %69 = tpu.memref_slice %arg8[%c3_i32_42, %c0_i32_43] : memref<8x32xf32, #tpu.memory_space<vmem>> -> memref<1x32xf32, #tpu.memory_space<vmem>>
    %70 = tpu.memref_slice %arg9[%c3_i32_40] : memref<8x!tpu.dma_semaphore, #tpu.memory_space<semaphore_mem>> -> memref<1x!tpu.dma_semaphore, #tpu.memory_space<semaphore_mem>>
    %71 = tpu.memref_squeeze %70 : memref<1x!tpu.dma_semaphore, #tpu.memory_space<semaphore_mem>> -> memref<!tpu.dma_semaphore, #tpu.memory_space<semaphore_mem>>
    tpu.wait_dma2 semaphore(%71 : memref<!tpu.dma_semaphore, #tpu.memory_space<semaphore_mem>>) src(%68 : memref<1x32xf32, #tpu.memory_space<any>>) dst(%69 : memref<1x32xf32, #tpu.memory_space<vmem>>)
    %72 = arith.index_cast %arg0 : i32 to index
    %c4_44 = arith.constant 4 : index
    %73 = memref.load %arg1[%72, %c4_44] : memref<2x8xi32, #tpu.memory_space<smem>>
    %c4_i32_45 = arith.constant 4 : i32
    %c0_i32_46 = arith.constant 0 : i32
    %74 = tpu.memref_slice %arg2[%73, %c0_i32_46] : memref<64x32xf32, #tpu.memory_space<any>> -> memref<1x32xf32, #tpu.memory_space<any>>
    %c4_i32_47 = arith.constant 4 : i32
    %c0_i32_48 = arith.constant 0 : i32
    %75 = tpu.memref_slice %arg8[%c4_i32_47, %c0_i32_48] : memref<8x32xf32, #tpu.memory_space<vmem>> -> memref<1x32xf32, #tpu.memory_space<vmem>>
    %76 = tpu.memref_slice %arg9[%c4_i32_45] : memref<8x!tpu.dma_semaphore, #tpu.memory_space<semaphore_mem>> -> memref<1x!tpu.dma_semaphore, #tpu.memory_space<semaphore_mem>>
    %77 = tpu.memref_squeeze %76 : memref<1x!tpu.dma_semaphore, #tpu.memory_space<semaphore_mem>> -> memref<!tpu.dma_semaphore, #tpu.memory_space<semaphore_mem>>
    tpu.wait_dma2 semaphore(%77 : memref<!tpu.dma_semaphore, #tpu.memory_space<semaphore_mem>>) src(%74 : memref<1x32xf32, #tpu.memory_space<any>>) dst(%75 : memref<1x32xf32, #tpu.memory_space<vmem>>)
    %78 = arith.index_cast %arg0 : i32 to index
    %c5_49 = arith.constant 5 : index
    %79 = memref.load %arg1[%78, %c5_49] : memref<2x8xi32, #tpu.memory_space<smem>>
    %c5_i32_50 = arith.constant 5 : i32
    %c0_i32_51 = arith.constant 0 : i32
    %80 = tpu.memref_slice %arg2[%79, %c0_i32_51] : memref<64x32xf32, #tpu.memory_space<any>> -> memref<1x32xf32, #tpu.memory_space<any>>
    %c5_i32_52 = arith.constant 5 : i32
    %c0_i32_53 = arith.constant 0 : i32
    %81 = tpu.memref_slice %arg8[%c5_i32_52, %c0_i32_53] : memref<8x32xf32, #tpu.memory_space<vmem>> -> memref<1x32xf32, #tpu.memory_space<vmem>>
    %82 = tpu.memref_slice %arg9[%c5_i32_50] : memref<8x!tpu.dma_semaphore, #tpu.memory_space<semaphore_mem>> -> memref<1x!tpu.dma_semaphore, #tpu.memory_space<semaphore_mem>>
    %83 = tpu.memref_squeeze %82 : memref<1x!tpu.dma_semaphore, #tpu.memory_space<semaphore_mem>> -> memref<!tpu.dma_semaphore, #tpu.memory_space<semaphore_mem>>
    tpu.wait_dma2 semaphore(%83 : memref<!tpu.dma_semaphore, #tpu.memory_space<semaphore_mem>>) src(%80 : memref<1x32xf32, #tpu.memory_space<any>>) dst(%81 : memref<1x32xf32, #tpu.memory_space<vmem>>)
    %84 = arith.index_cast %arg0 : i32 to index
    %c6_54 = arith.constant 6 : index
    %85 = memref.load %arg1[%84, %c6_54] : memref<2x8xi32, #tpu.memory_space<smem>>
    %c6_i32_55 = arith.constant 6 : i32
    %c0_i32_56 = arith.constant 0 : i32
    %86 = tpu.memref_slice %arg2[%85, %c0_i32_56] : memref<64x32xf32, #tpu.memory_space<any>> -> memref<1x32xf32, #tpu.memory_space<any>>
    %c6_i32_57 = arith.constant 6 : i32
    %c0_i32_58 = arith.constant 0 : i32
    %87 = tpu.memref_slice %arg8[%c6_i32_57, %c0_i32_58] : memref<8x32xf32, #tpu.memory_space<vmem>> -> memref<1x32xf32, #tpu.memory_space<vmem>>
    %88 = tpu.memref_slice %arg9[%c6_i32_55] : memref<8x!tpu.dma_semaphore, #tpu.memory_space<semaphore_mem>> -> memref<1x!tpu.dma_semaphore, #tpu.memory_space<semaphore_mem>>
    %89 = tpu.memref_squeeze %88 : memref<1x!tpu.dma_semaphore, #tpu.memory_space<semaphore_mem>> -> memref<!tpu.dma_semaphore, #tpu.memory_space<semaphore_mem>>
    tpu.wait_dma2 semaphore(%89 : memref<!tpu.dma_semaphore, #tpu.memory_space<semaphore_mem>>) src(%86 : memref<1x32xf32, #tpu.memory_space<any>>) dst(%87 : memref<1x32xf32, #tpu.memory_space<vmem>>)
    %90 = arith.index_cast %arg0 : i32 to index
    %c7_59 = arith.constant 7 : index
    %91 = memref.load %arg1[%90, %c7_59] : memref<2x8xi32, #tpu.memory_space<smem>>
    %c7_i32_60 = arith.constant 7 : i32
    %c0_i32_61 = arith.constant 0 : i32
    %92 = tpu.memref_slice %arg2[%91, %c0_i32_61] : memref<64x32xf32, #tpu.memory_space<any>> -> memref<1x32xf32, #tpu.memory_space<any>>
    %c7_i32_62 = arith.constant 7 : i32
    %c0_i32_63 = arith.constant 0 : i32
    %93 = tpu.memref_slice %arg8[%c7_i32_62, %c0_i32_63] : memref<8x32xf32, #tpu.memory_space<vmem>> -> memref<1x32xf32, #tpu.memory_space<vmem>>
    %94 = tpu.memref_slice %arg9[%c7_i32_60] : memref<8x!tpu.dma_semaphore, #tpu.memory_space<semaphore_mem>> -> memref<1x!tpu.dma_semaphore, #tpu.memory_space<semaphore_mem>>
    %95 = tpu.memref_squeeze %94 : memref<1x!tpu.dma_semaphore, #tpu.memory_space<semaphore_mem>> -> memref<!tpu.dma_semaphore, #tpu.memory_space<semaphore_mem>>
    tpu.wait_dma2 semaphore(%95 : memref<!tpu.dma_semaphore, #tpu.memory_space<semaphore_mem>>) src(%92 : memref<1x32xf32, #tpu.memory_space<any>>) dst(%93 : memref<1x32xf32, #tpu.memory_space<vmem>>)
    %c0_64 = arith.constant 0 : index
    %c0_65 = arith.constant 0 : index
    %96 = vector.load %arg8[%c0_64, %c0_65] : memref<8x32xf32, #tpu.memory_space<vmem>>, vector<8x32xf32>
    %c0_66 = arith.constant 0 : index
    %c0_67 = arith.constant 0 : index
    %97 = vector.load %arg3[%c0_66, %c0_67] : memref<8x32xf32, #tpu.memory_space<vmem>>, vector<8x32xf32>
    %98 = arith.addf %96, %97 : vector<8x32xf32>
    %c0_68 = arith.constant 0 : index
    %c0_69 = arith.constant 0 : index
    %99 = vector.load %arg4[%c0_68, %c0_69] : memref<2x32xf32, #tpu.memory_space<vmem>>, vector<1x32xf32>
    %100 = vector.broadcast %99 : vector<1x32xf32> to vector<8x32xf32>
    %101 = arith.addf %98, %100 : vector<8x32xf32>
    %c0_70 = arith.constant 0 : index
    %c0_71 = arith.constant 0 : index
    %102 = vector.load %arg5[%c0_70, %c0_71] : memref<1x32xf32, #tpu.memory_space<vmem>>, vector<1x32xf32>
    %c0_72 = arith.constant 0 : index
    %c0_73 = arith.constant 0 : index
    %103 = vector.load %arg6[%c0_72, %c0_73] : memref<1x32xf32, #tpu.memory_space<vmem>>, vector<1x32xf32>
    %cst = arith.constant dense<0.000000e+00> : vector<8xf32>
    %104 = vector.multi_reduction <add>, %101, %cst [1] : vector<8x32xf32> to vector<8xf32>
    %105 = vector.shape_cast %104 : vector<8xf32> to vector<8x1xf32>
    %cst_74 = arith.constant 3.200000e+01 : f32
    %106 = vector.broadcast %cst_74 : f32 to vector<8x1xf32>
    %107 = arith.divf %105, %106 : vector<8x1xf32>
    %108 = vector.broadcast %107 : vector<8x1xf32> to vector<8x32xf32>
    %109 = arith.subf %101, %108 : vector<8x32xf32>
    %110 = arith.mulf %109, %109 : vector<8x32xf32>
    %cst_75 = arith.constant dense<0.000000e+00> : vector<8xf32>
    %111 = vector.multi_reduction <add>, %110, %cst_75 [1] : vector<8x32xf32> to vector<8xf32>
    %112 = vector.shape_cast %111 : vector<8xf32> to vector<8x1xf32>
    %cst_76 = arith.constant 3.200000e+01 : f32
    %113 = vector.broadcast %cst_76 : f32 to vector<8x1xf32>
    %114 = arith.divf %112, %113 : vector<8x1xf32>
    %cst_77 = arith.constant 9.99999974E-6 : f32
    %115 = vector.broadcast %cst_77 : f32 to vector<8x1xf32>
    %116 = arith.addf %114, %115 : vector<8x1xf32>
    %117 = math.rsqrt %116 : vector<8x1xf32>
    %118 = vector.broadcast %117 : vector<8x1xf32> to vector<8x32xf32>
    %119 = arith.mulf %109, %118 : vector<8x32xf32>
    %120 = vector.broadcast %102 : vector<1x32xf32> to vector<8x32xf32>
    %121 = arith.mulf %119, %120 : vector<8x32xf32>
    %122 = vector.broadcast %103 : vector<1x32xf32> to vector<8x32xf32>
    %123 = arith.addf %121, %122 : vector<8x32xf32>
    %c0_78 = arith.constant 0 : index
    %c0_79 = arith.constant 0 : index
    %c0_80 = arith.constant 0 : index
    %124 = vector.load %arg7[%c0_78, %c0_79, %c0_80] : memref<1x8x32xf32, #tpu.memory_space<vmem>>, vector<1x8x32xf32>
    %125 = vector.shape_cast %124 : vector<1x8x32xf32> to vector<8x32xf32>
    %126 = vector.shape_cast %123 : vector<8x32xf32> to vector<1x8x32xf32>
    tpu.vector_store %arg7[%c0_78, %c0_79, %c0_80], %126 {strides = array<i32>} : memref<1x8x32xf32, #tpu.memory_space<vmem>>, vector<1x8x32xf32>,
    return
  }
  func.func @transform_1(%arg0: i32, %arg1: memref<2x8xi32, #tpu.memory_space<smem>>) -> (i32, i32) {
    %c0_i32 = arith.constant 0 : i32
    %c0_i32_0 = arith.constant 0 : i32
    %c0_i32_1 = arith.constant 0 : i32
    return %c0_i32, %c0_i32_0 : i32, i32
  }
  func.func @transform_2(%arg0: i32, %arg1: memref<2x8xi32, #tpu.memory_space<smem>>) -> (i32, i32) {
    %c0_i32 = arith.constant 0 : i32
    %c0_i32_0 = arith.constant 0 : i32
    %c0_i32_1 = arith.constant 0 : i32
    return %c0_i32, %c0_i32_0 : i32, i32
  }
  func.func @transform_3(%arg0: i32, %arg1: memref<2x8xi32, #tpu.memory_space<smem>>) -> (i32, i32) {
    %c0_i32 = arith.constant 0 : i32
    %c0_i32_0 = arith.constant 0 : i32
    %c0_i32_1 = arith.constant 0 : i32
    return %c0_i32, %c0_i32_0 : i32, i32
  }
  func.func @transform_4(%arg0: i32, %arg1: memref<2x8xi32, #tpu.memory_space<smem>>) -> (i32, i32) {
    %c0_i32 = arith.constant 0 : i32
    %c0_i32_0 = arith.constant 0 : i32
    %c0_i32_1 = arith.constant 0 : i32
    return %c0_i32, %c0_i32_0 : i32, i32
  }
  func.func @transform_5(%arg0: i32, %arg1: memref<2x8xi32, #tpu.memory_space<smem>>) -> (i32, i32, i32) {
    %c0_i32 = arith.constant 0 : i32
    %c0_i32_0 = arith.constant 0 : i32
    %c0_i32_1 = arith.constant 0 : i32
    return %arg0, %c0_i32, %c0_i32_0 : i32, i32, i32
  }
}

module attributes {stable_mosaic.version = 11 : i64} {
  func.func @_heads_kernel(%arg0: i32, %arg1: i32, %arg2: memref<1x8x32xf32, #tpu.memory_space<vmem>>, %arg3: memref<32x32xf32, #tpu.memory_space<vmem>>, %arg4: memref<1x32xf32, #tpu.memory_space<vmem>>, %arg5: memref<1x32xf32, #tpu.memory_space<vmem>>, %arg6: memref<1x32xf32, #tpu.memory_space<vmem>>, %arg7: memref<32x64xf32, #tpu.memory_space<vmem>>, %arg8: memref<1x64xf32, #tpu.memory_space<vmem>>, %arg9: memref<32x4xf32, #tpu.memory_space<vmem>>, %arg10: memref<1x4xf32, #tpu.memory_space<vmem>>, %arg11: memref<1x8x64xf32, #tpu.memory_space<vmem>>, %arg12: memref<1x1x4xf32, #tpu.memory_space<vmem>>, %arg13: memref<8x32xf32, #tpu.memory_space<vmem>>) attributes {dimension_semantics = [#tpu.dimension_semantics<parallel>, #tpu.dimension_semantics<arbitrary>], iteration_bounds = array<i64: 2, 1>, scalar_prefetch = 0 : i64, scratch_operands = 1 : i64, tpu.core_type = #tpu.core_type<tc>, window_params = [{transform_indices = @transform_0, window_bounds = array<i64: 1, 8, 32>}, {pipeline_mode = #tpu.pipeline_mode<synchronous>, transform_indices = @transform_1, window_bounds = array<i64: 32, 32>}, {pipeline_mode = #tpu.pipeline_mode<synchronous>, transform_indices = @transform_2, window_bounds = array<i64: 1, 32>}, {pipeline_mode = #tpu.pipeline_mode<synchronous>, transform_indices = @transform_3, window_bounds = array<i64: 1, 32>}, {pipeline_mode = #tpu.pipeline_mode<synchronous>, transform_indices = @transform_4, window_bounds = array<i64: 1, 32>}, {transform_indices = @transform_5, window_bounds = array<i64: 32, 64>}, {transform_indices = @transform_6, window_bounds = array<i64: 1, 64>}, {pipeline_mode = #tpu.pipeline_mode<synchronous>, transform_indices = @transform_7, window_bounds = array<i64: 32, 4>}, {pipeline_mode = #tpu.pipeline_mode<synchronous>, transform_indices = @transform_8, window_bounds = array<i64: 1, 4>}, {transform_indices = @transform_9, window_bounds = array<i64: 1, 8, 64>}, {transform_indices = @transform_10, window_bounds = array<i64: 1, 1, 4>}]} {
    %c0_i32 = arith.constant 0 : i32
    %0 = arith.cmpi eq, %arg1, %c0_i32 : i32
    %1 = arith.extui %0 : i1 to i32
    %c0_i32_0 = arith.constant 0 : i32
    %2 = arith.cmpi ne, %1, %c0_i32_0 : i32
    scf.if %2 {
      %c0_9 = arith.constant 0 : index
      %c0_10 = arith.constant 0 : index
      %c0_11 = arith.constant 0 : index
      %12 = vector.load %arg2[%c0_9, %c0_10, %c0_11] : memref<1x8x32xf32, #tpu.memory_space<vmem>>, vector<1x8x32xf32>
      %13 = vector.shape_cast %12 : vector<1x8x32xf32> to vector<8x32xf32>
      %c0_12 = arith.constant 0 : index
      %c0_13 = arith.constant 0 : index
      %14 = vector.load %arg3[%c0_12, %c0_13] : memref<32x32xf32, #tpu.memory_space<vmem>>, vector<32x32xf32>
      %cst_14 = arith.constant dense<0.000000e+00> : vector<8x32xf32>
      %15 = tpu.matmul %13, %14, %cst_14 {dimension_numbers = #tpu.dot_dimension_numbers<[1], [0], [0], [1], [0, 0, 1, 1], [], []>} : vector<8x32xf32>, vector<32x32xf32>, vector<8x32xf32> -> vector<8x32xf32>
      %c0_15 = arith.constant 0 : index
      %c0_16 = arith.constant 0 : index
      %16 = vector.load %arg4[%c0_15, %c0_16] : memref<1x32xf32, #tpu.memory_space<vmem>>, vector<1x32xf32>
      %17 = vector.broadcast %16 : vector<1x32xf32> to vector<8x32xf32>
      %18 = arith.addf %15, %17 : vector<8x32xf32>
      %cst_17 = arith.constant 5.000000e-01 : f32
      %19 = vector.broadcast %cst_17 : f32 to vector<8x32xf32>
      %20 = arith.mulf %18, %19 : vector<8x32xf32>
      %cst_18 = arith.constant 0.707106769 : f32
      %21 = vector.broadcast %cst_18 : f32 to vector<8x32xf32>
      %22 = arith.mulf %18, %21 : vector<8x32xf32>
      %23 = math.absf %22 : vector<8x32xf32>
      %cst_19 = arith.constant 0.327591091 : f32
      %24 = vector.broadcast %cst_19 : f32 to vector<8x32xf32>
      %25 = arith.mulf %24, %23 : vector<8x32xf32>
      %cst_20 = arith.constant 1.000000e+00 : f32
      %26 = vector.broadcast %cst_20 : f32 to vector<8x32xf32>
      %27 = arith.addf %26, %25 : vector<8x32xf32>
      %cst_21 = arith.constant 1.000000e+00 : f32
      %28 = vector.broadcast %cst_21 : f32 to vector<8x32xf32>
      %29 = arith.divf %28, %27 : vector<8x32xf32>
      %cst_22 = arith.constant 1.06140542 : f32
      %30 = vector.broadcast %cst_22 : f32 to vector<8x32xf32>
      %31 = arith.mulf %30, %29 : vector<8x32xf32>
      %cst_23 = arith.constant -1.45315206 : f32
      %32 = vector.broadcast %cst_23 : f32 to vector<8x32xf32>
      %33 = arith.addf %31, %32 : vector<8x32xf32>
      %34 = arith.mulf %33, %29 : vector<8x32xf32>
      %cst_24 = arith.constant 1.42141378 : f32
      %35 = vector.broadcast %cst_24 : f32 to vector<8x32xf32>
      %36 = arith.addf %34, %35 : vector<8x32xf32>
      %37 = arith.mulf %36, %29 : vector<8x32xf32>
      %cst_25 = arith.constant -0.284496725 : f32
      %38 = vector.broadcast %cst_25 : f32 to vector<8x32xf32>
      %39 = arith.addf %37, %38 : vector<8x32xf32>
      %40 = arith.mulf %39, %29 : vector<8x32xf32>
      %cst_26 = arith.constant 0.254829586 : f32
      %41 = vector.broadcast %cst_26 : f32 to vector<8x32xf32>
      %42 = arith.addf %40, %41 : vector<8x32xf32>
      %43 = arith.mulf %42, %29 : vector<8x32xf32>
      %cst_27 = arith.constant 0.000000e+00 : f32
      %44 = vector.broadcast %cst_27 : f32 to vector<8x32xf32>
      %45 = arith.subf %44, %23 : vector<8x32xf32>
      %46 = arith.mulf %45, %23 : vector<8x32xf32>
      %47 = math.exp %46 : vector<8x32xf32>
      %48 = arith.mulf %43, %47 : vector<8x32xf32>
      %cst_28 = arith.constant 1.000000e+00 : f32
      %49 = vector.broadcast %cst_28 : f32 to vector<8x32xf32>
      %50 = arith.subf %49, %48 : vector<8x32xf32>
      %cst_29 = arith.constant 0.000000e+00 : f32
      %51 = vector.broadcast %cst_29 : f32 to vector<8x32xf32>
      %52 = arith.cmpf oge, %22, %51 : vector<8x32xf32>
      %cst_30 = arith.constant 0.000000e+00 : f32
      %53 = vector.broadcast %cst_30 : f32 to vector<8x32xf32>
      %54 = arith.subf %53, %50 : vector<8x32xf32>
      %55 = arith.select %52, %50, %54 : vector<8x32xi1>, vector<8x32xf32>
      %cst_31 = arith.constant 1.000000e+00 : f32
      %56 = vector.broadcast %cst_31 : f32 to vector<8x32xf32>
      %57 = arith.addf %56, %55 : vector<8x32xf32>
      %58 = arith.mulf %20, %57 : vector<8x32xf32>
      %c0_32 = arith.constant 0 : index
      %c0_33 = arith.constant 0 : index
      %59 = vector.load %arg5[%c0_32, %c0_33] : memref<1x32xf32, #tpu.memory_space<vmem>>, vector<1x32xf32>
      %c0_34 = arith.constant 0 : index
      %c0_35 = arith.constant 0 : index
      %60 = vector.load %arg6[%c0_34, %c0_35] : memref<1x32xf32, #tpu.memory_space<vmem>>, vector<1x32xf32>
      %cst_36 = arith.constant dense<0.000000e+00> : vector<8xf32>
      %61 = vector.multi_reduction <add>, %58, %cst_36 [1] : vector<8x32xf32> to vector<8xf32>
      %62 = vector.shape_cast %61 : vector<8xf32> to vector<8x1xf32>
      %cst_37 = arith.constant 3.200000e+01 : f32
      %63 = vector.broadcast %cst_37 : f32 to vector<8x1xf32>
      %64 = arith.divf %62, %63 : vector<8x1xf32>
      %65 = vector.broadcast %64 : vector<8x1xf32> to vector<8x32xf32>
      %66 = arith.subf %58, %65 : vector<8x32xf32>
      %67 = arith.mulf %66, %66 : vector<8x32xf32>
      %cst_38 = arith.constant dense<0.000000e+00> : vector<8xf32>
      %68 = vector.multi_reduction <add>, %67, %cst_38 [1] : vector<8x32xf32> to vector<8xf32>
      %69 = vector.shape_cast %68 : vector<8xf32> to vector<8x1xf32>
      %cst_39 = arith.constant 3.200000e+01 : f32
      %70 = vector.broadcast %cst_39 : f32 to vector<8x1xf32>
      %71 = arith.divf %69, %70 : vector<8x1xf32>
      %cst_40 = arith.constant 9.99999974E-6 : f32
      %72 = vector.broadcast %cst_40 : f32 to vector<8x1xf32>
      %73 = arith.addf %71, %72 : vector<8x1xf32>
      %74 = math.rsqrt %73 : vector<8x1xf32>
      %75 = vector.broadcast %74 : vector<8x1xf32> to vector<8x32xf32>
      %76 = arith.mulf %66, %75 : vector<8x32xf32>
      %77 = vector.broadcast %59 : vector<1x32xf32> to vector<8x32xf32>
      %78 = arith.mulf %76, %77 : vector<8x32xf32>
      %79 = vector.broadcast %60 : vector<1x32xf32> to vector<8x32xf32>
      %80 = arith.addf %78, %79 : vector<8x32xf32>
      %c0_41 = arith.constant 0 : index
      %c0_42 = arith.constant 0 : index
      %81 = vector.load %arg13[%c0_41, %c0_42] : memref<8x32xf32, #tpu.memory_space<vmem>>, vector<8x32xf32>
      tpu.vector_store %arg13[%c0_41, %c0_42], %80 {strides = array<i32>} : memref<8x32xf32, #tpu.memory_space<vmem>>, vector<8x32xf32>,
      %82 = vector.extract_strided_slice %13 {offsets = [0, 0], sizes = [1, 32], strides = [1, 1]} : vector<8x32xf32> to vector<1x32xf32>
      %c0_43 = arith.constant 0 : index
      %c0_44 = arith.constant 0 : index
      %83 = vector.load %arg9[%c0_43, %c0_44] : memref<32x4xf32, #tpu.memory_space<vmem>>, vector<32x4xf32>
      %cst_45 = arith.constant dense<0.000000e+00> : vector<1x4xf32>
      %84 = tpu.matmul %82, %83, %cst_45 {dimension_numbers = #tpu.dot_dimension_numbers<[1], [0], [0], [1], [0, 0, 1, 1], [], []>} : vector<1x32xf32>, vector<32x4xf32>, vector<1x4xf32> -> vector<1x4xf32>
      %c0_46 = arith.constant 0 : index
      %c0_47 = arith.constant 0 : index
      %85 = vector.load %arg10[%c0_46, %c0_47] : memref<1x4xf32, #tpu.memory_space<vmem>>, vector<1x4xf32>
      %86 = arith.addf %84, %85 : vector<1x4xf32>
      %c0_48 = arith.constant 0 : index
      %c0_49 = arith.constant 0 : index
      %c0_50 = arith.constant 0 : index
      %87 = vector.load %arg12[%c0_48, %c0_49, %c0_50] : memref<1x1x4xf32, #tpu.memory_space<vmem>>, vector<1x1x4xf32>
      %88 = vector.shape_cast %87 : vector<1x1x4xf32> to vector<1x4xf32>
      %89 = vector.shape_cast %86 : vector<1x4xf32> to vector<1x1x4xf32>
      tpu.vector_store %arg12[%c0_48, %c0_49, %c0_50], %89 {strides = array<i32>} : memref<1x1x4xf32, #tpu.memory_space<vmem>>, vector<1x1x4xf32>,
    } else {
    }
    %c0 = arith.constant 0 : index
    %c0_1 = arith.constant 0 : index
    %3 = vector.load %arg13[%c0, %c0_1] : memref<8x32xf32, #tpu.memory_space<vmem>>, vector<8x32xf32>
    %c0_2 = arith.constant 0 : index
    %c0_3 = arith.constant 0 : index
    %4 = vector.load %arg7[%c0_2, %c0_3] : memref<32x64xf32, #tpu.memory_space<vmem>>, vector<32x64xf32>
    %cst = arith.constant dense<0.000000e+00> : vector<8x64xf32>
    %5 = tpu.matmul %3, %4, %cst {dimension_numbers = #tpu.dot_dimension_numbers<[1], [0], [0], [1], [0, 0, 1, 1], [], []>} : vector<8x32xf32>, vector<32x64xf32>, vector<8x64xf32> -> vector<8x64xf32>
    %c0_4 = arith.constant 0 : index
    %c0_5 = arith.constant 0 : index
    %6 = vector.load %arg8[%c0_4, %c0_5] : memref<1x64xf32, #tpu.memory_space<vmem>>, vector<1x64xf32>
    %7 = vector.broadcast %6 : vector<1x64xf32> to vector<8x64xf32>
    %8 = arith.addf %5, %7 : vector<8x64xf32>
    %c0_6 = arith.constant 0 : index
    %c0_7 = arith.constant 0 : index
    %c0_8 = arith.constant 0 : index
    %9 = vector.load %arg11[%c0_6, %c0_7, %c0_8] : memref<1x8x64xf32, #tpu.memory_space<vmem>>, vector<1x8x64xf32>
    %10 = vector.shape_cast %9 : vector<1x8x64xf32> to vector<8x64xf32>
    %11 = vector.shape_cast %8 : vector<8x64xf32> to vector<1x8x64xf32>
    tpu.vector_store %arg11[%c0_6, %c0_7, %c0_8], %11 {strides = array<i32>} : memref<1x8x64xf32, #tpu.memory_space<vmem>>, vector<1x8x64xf32>,
    return
  }
  func.func @transform_0(%arg0: i32, %arg1: i32) -> (i32, i32, i32) {
    %c0_i32 = arith.constant 0 : i32
    %c0_i32_0 = arith.constant 0 : i32
    %c0_i32_1 = arith.constant 0 : i32
    return %arg0, %c0_i32, %c0_i32_0 : i32, i32, i32
  }
  func.func @transform_1(%arg0: i32, %arg1: i32) -> (i32, i32) {
    %c0_i32 = arith.constant 0 : i32
    %c0_i32_0 = arith.constant 0 : i32
    %c0_i32_1 = arith.constant 0 : i32
    return %c0_i32, %c0_i32_0 : i32, i32
  }
  func.func @transform_2(%arg0: i32, %arg1: i32) -> (i32, i32) {
    %c0_i32 = arith.constant 0 : i32
    %c0_i32_0 = arith.constant 0 : i32
    %c0_i32_1 = arith.constant 0 : i32
    return %c0_i32, %c0_i32_0 : i32, i32
  }
  func.func @transform_3(%arg0: i32, %arg1: i32) -> (i32, i32) {
    %c0_i32 = arith.constant 0 : i32
    %c0_i32_0 = arith.constant 0 : i32
    %c0_i32_1 = arith.constant 0 : i32
    return %c0_i32, %c0_i32_0 : i32, i32
  }
  func.func @transform_4(%arg0: i32, %arg1: i32) -> (i32, i32) {
    %c0_i32 = arith.constant 0 : i32
    %c0_i32_0 = arith.constant 0 : i32
    %c0_i32_1 = arith.constant 0 : i32
    return %c0_i32, %c0_i32_0 : i32, i32
  }
  func.func @transform_5(%arg0: i32, %arg1: i32) -> (i32, i32) {
    %c0_i32 = arith.constant 0 : i32
    %c0_i32_0 = arith.constant 0 : i32
    return %c0_i32, %arg1 : i32, i32
  }
  func.func @transform_6(%arg0: i32, %arg1: i32) -> (i32, i32) {
    %c0_i32 = arith.constant 0 : i32
    %c0_i32_0 = arith.constant 0 : i32
    return %c0_i32, %arg1 : i32, i32
  }
  func.func @transform_7(%arg0: i32, %arg1: i32) -> (i32, i32) {
    %c0_i32 = arith.constant 0 : i32
    %c0_i32_0 = arith.constant 0 : i32
    %c0_i32_1 = arith.constant 0 : i32
    return %c0_i32, %c0_i32_0 : i32, i32
  }
  func.func @transform_8(%arg0: i32, %arg1: i32) -> (i32, i32) {
    %c0_i32 = arith.constant 0 : i32
    %c0_i32_0 = arith.constant 0 : i32
    %c0_i32_1 = arith.constant 0 : i32
    return %c0_i32, %c0_i32_0 : i32, i32
  }
  func.func @transform_9(%arg0: i32, %arg1: i32) -> (i32, i32, i32) {
    %c0_i32 = arith.constant 0 : i32
    %c0_i32_0 = arith.constant 0 : i32
    return %arg0, %c0_i32, %arg1 : i32, i32, i32
  }
  func.func @transform_10(%arg0: i32, %arg1: i32) -> (i32, i32, i32) {
    %c0_i32 = arith.constant 0 : i32
    %c0_i32_0 = arith.constant 0 : i32
    %c0_i32_1 = arith.constant 0 : i32
    return %arg0, %c0_i32, %c0_i32_0 : i32, i32, i32
  }
}

module attributes {stable_mosaic.version = 11 : i64} {
  func.func @_encoder_kernel(%arg0: i32, %arg1: i32, %arg2: memref<1x8x32xf32, #tpu.memory_space<vmem>>, %arg3: memref<1x32x96xf32, #tpu.memory_space<vmem>>, %arg4: memref<1x1x96xf32, #tpu.memory_space<vmem>>, %arg5: memref<1x32x32xf32, #tpu.memory_space<vmem>>, %arg6: memref<1x1x32xf32, #tpu.memory_space<vmem>>, %arg7: memref<1x1x32xf32, #tpu.memory_space<vmem>>, %arg8: memref<1x1x32xf32, #tpu.memory_space<vmem>>, %arg9: memref<1x32x64xf32, #tpu.memory_space<vmem>>, %arg10: memref<1x1x64xf32, #tpu.memory_space<vmem>>, %arg11: memref<1x64x32xf32, #tpu.memory_space<vmem>>, %arg12: memref<1x1x32xf32, #tpu.memory_space<vmem>>, %arg13: memref<1x1x32xf32, #tpu.memory_space<vmem>>, %arg14: memref<1x1x32xf32, #tpu.memory_space<vmem>>, %arg15: memref<1x8x32xf32, #tpu.memory_space<vmem>>, %arg16: memref<8x32xf32, #tpu.memory_space<vmem>>, %arg17: memref<8x32xf32, #tpu.memory_space<vmem>>) attributes {dimension_semantics = [#tpu.dimension_semantics<parallel>, #tpu.dimension_semantics<arbitrary>], iteration_bounds = array<i64: 2, 2>, scalar_prefetch = 0 : i64, scratch_operands = 2 : i64, tpu.core_type = #tpu.core_type<tc>, window_params = [{transform_indices = @transform_0, window_bounds = array<i64: 1, 8, 32>}, {transform_indices = @transform_1, window_bounds = array<i64: 1, 32, 96>}, {transform_indices = @transform_2, window_bounds = array<i64: 1, 1, 96>}, {transform_indices = @transform_3, window_bounds = array<i64: 1, 32, 32>}, {transform_indices = @transform_4, window_bounds = array<i64: 1, 1, 32>}, {transform_indices = @transform_5, window_bounds = array<i64: 1, 1, 32>}, {transform_indices = @transform_6, window_bounds = array<i64: 1, 1, 32>}, {transform_indices = @transform_7, window_bounds = array<i64: 1, 32, 64>}, {transform_indices = @transform_8, window_bounds = array<i64: 1, 1, 64>}, {transform_indices = @transform_9, window_bounds = array<i64: 1, 64, 32>}, {transform_indices = @transform_10, window_bounds = array<i64: 1, 1, 32>}, {transform_indices = @transform_11, window_bounds = array<i64: 1, 1, 32>}, {transform_indices = @transform_12, window_bounds = array<i64: 1, 1, 32>}, {transform_indices = @transform_13, window_bounds = array<i64: 1, 8, 32>}]} {
    %c0_i32 = arith.constant 0 : i32
    %0 = arith.cmpi eq, %arg1, %c0_i32 : i32
    %1 = arith.extui %0 : i1 to i32
    %c0_i32_0 = arith.constant 0 : i32
    %2 = arith.cmpi ne, %1, %c0_i32_0 : i32
    scf.if %2 {
      %c0_96 = arith.constant 0 : index
      %c0_97 = arith.constant 0 : index
      %c0_98 = arith.constant 0 : index
      %202 = vector.load %arg2[%c0_96, %c0_97, %c0_98] : memref<1x8x32xf32, #tpu.memory_space<vmem>>, vector<1x8x32xf32>
      %203 = vector.shape_cast %202 : vector<1x8x32xf32> to vector<8x32xf32>
      %c0_99 = arith.constant 0 : index
      %c0_100 = arith.constant 0 : index
      %204 = vector.load %arg16[%c0_99, %c0_100] : memref<8x32xf32, #tpu.memory_space<vmem>>, vector<8x32xf32>
      tpu.vector_store %arg16[%c0_99, %c0_100], %203 {strides = array<i32>} : memref<8x32xf32, #tpu.memory_space<vmem>>, vector<8x32xf32>,
    } else {
    }
    %c0 = arith.constant 0 : index
    %c0_1 = arith.constant 0 : index
    %3 = vector.load %arg16[%c0, %c0_1] : memref<8x32xf32, #tpu.memory_space<vmem>>, vector<8x32xf32>
    %c0_2 = arith.constant 0 : index
    %c0_3 = arith.constant 0 : index
    %c0_4 = arith.constant 0 : index
    %4 = vector.load %arg3[%c0_2, %c0_3, %c0_4] : memref<1x32x96xf32, #tpu.memory_space<vmem>>, vector<1x32x96xf32>
    %5 = vector.shape_cast %4 : vector<1x32x96xf32> to vector<32x96xf32>
    %cst = arith.constant dense<0.000000e+00> : vector<8x96xf32>
    %6 = tpu.matmul %3, %5, %cst {dimension_numbers = #tpu.dot_dimension_numbers<[1], [0], [0], [1], [0, 0, 1, 1], [], []>} : vector<8x32xf32>, vector<32x96xf32>, vector<8x96xf32> -> vector<8x96xf32>
    %c0_5 = arith.constant 0 : index
    %c0_6 = arith.constant 0 : index
    %c0_7 = arith.constant 0 : index
    %7 = vector.load %arg4[%c0_5, %c0_6, %c0_7] : memref<1x1x96xf32, #tpu.memory_space<vmem>>, vector<1x1x96xf32>
    %8 = vector.shape_cast %7 : vector<1x1x96xf32> to vector<1x96xf32>
    %9 = vector.broadcast %8 : vector<1x96xf32> to vector<8x96xf32>
    %10 = arith.addf %6, %9 : vector<8x96xf32>
    %11 = vector.extract_strided_slice %10 {offsets = [0, 0], sizes = [8, 32], strides = [1, 1]} : vector<8x96xf32> to vector<8x32xf32>
    %12 = vector.extract_strided_slice %10 {offsets = [0, 32], sizes = [8, 32], strides = [1, 1]} : vector<8x96xf32> to vector<8x32xf32>
    %13 = vector.extract_strided_slice %10 {offsets = [0, 64], sizes = [8, 32], strides = [1, 1]} : vector<8x96xf32> to vector<8x32xf32>
    %14 = vector.extract_strided_slice %11 {offsets = [0, 0], sizes = [8, 8], strides = [1, 1]} : vector<8x32xf32> to vector<8x8xf32>
    %15 = vector.extract_strided_slice %12 {offsets = [0, 0], sizes = [8, 8], strides = [1, 1]} : vector<8x32xf32> to vector<8x8xf32>
    %cst_8 = arith.constant dense<0.000000e+00> : vector<8x8xf32>
    %16 = tpu.matmul %14, %15, %cst_8 {dimension_numbers = #tpu.dot_dimension_numbers<[1], [1], [0], [0], [0, 0, 1, 0], [], []>} : vector<8x8xf32>, vector<8x8xf32>, vector<8x8xf32> -> vector<8x8xf32>
    %cst_9 = arith.constant 0.353553385 : f32
    %17 = vector.broadcast %cst_9 : f32 to vector<8x8xf32>
    %18 = arith.mulf %16, %17 : vector<8x8xf32>
    %cst_10 = arith.constant dense<0xFF800000> : vector<8xf32>
    %19 = vector.multi_reduction <maximumf>, %18, %cst_10 [1] : vector<8x8xf32> to vector<8xf32>
    %20 = vector.shape_cast %19 : vector<8xf32> to vector<8x1xf32>
    %21 = vector.broadcast %20 : vector<8x1xf32> to vector<8x8xf32>
    %22 = arith.subf %18, %21 : vector<8x8xf32>
    %23 = math.exp %22 : vector<8x8xf32>
    %cst_11 = arith.constant dense<0.000000e+00> : vector<8xf32>
    %24 = vector.multi_reduction <add>, %23, %cst_11 [1] : vector<8x8xf32> to vector<8xf32>
    %25 = vector.shape_cast %24 : vector<8xf32> to vector<8x1xf32>
    %26 = vector.extract_strided_slice %13 {offsets = [0, 0], sizes = [8, 8], strides = [1, 1]} : vector<8x32xf32> to vector<8x8xf32>
    %cst_12 = arith.constant dense<0.000000e+00> : vector<8x8xf32>
    %27 = tpu.matmul %23, %26, %cst_12 {dimension_numbers = #tpu.dot_dimension_numbers<[1], [0], [0], [1], [0, 0, 1, 1], [], []>} : vector<8x8xf32>, vector<8x8xf32>, vector<8x8xf32> -> vector<8x8xf32>
    %28 = tpu.reciprocal %25 : vector<8x1xf32> -> vector<8x1xf32>
    %29 = vector.broadcast %28 : vector<8x1xf32> to vector<8x8xf32>
    %30 = arith.mulf %27, %29 : vector<8x8xf32>
    %c0_13 = arith.constant 0 : index
    %c0_14 = arith.constant 0 : index
    %31 = vector.load %arg17[%c0_13, %c0_14] : memref<8x32xf32, #tpu.memory_space<vmem>>, vector<8x8xf32>
    tpu.vector_store %arg17[%c0_13, %c0_14], %30 {strides = array<i32>} : memref<8x32xf32, #tpu.memory_space<vmem>>, vector<8x8xf32>,
    %32 = vector.extract_strided_slice %11 {offsets = [0, 8], sizes = [8, 8], strides = [1, 1]} : vector<8x32xf32> to vector<8x8xf32>
    %33 = vector.extract_strided_slice %12 {offsets = [0, 8], sizes = [8, 8], strides = [1, 1]} : vector<8x32xf32> to vector<8x8xf32>
    %cst_15 = arith.constant dense<0.000000e+00> : vector<8x8xf32>
    %34 = tpu.matmul %32, %33, %cst_15 {dimension_numbers = #tpu.dot_dimension_numbers<[1], [1], [0], [0], [0, 0, 1, 0], [], []>} : vector<8x8xf32>, vector<8x8xf32>, vector<8x8xf32> -> vector<8x8xf32>
    %cst_16 = arith.constant 0.353553385 : f32
    %35 = vector.broadcast %cst_16 : f32 to vector<8x8xf32>
    %36 = arith.mulf %34, %35 : vector<8x8xf32>
    %cst_17 = arith.constant dense<0xFF800000> : vector<8xf32>
    %37 = vector.multi_reduction <maximumf>, %36, %cst_17 [1] : vector<8x8xf32> to vector<8xf32>
    %38 = vector.shape_cast %37 : vector<8xf32> to vector<8x1xf32>
    %39 = vector.broadcast %38 : vector<8x1xf32> to vector<8x8xf32>
    %40 = arith.subf %36, %39 : vector<8x8xf32>
    %41 = math.exp %40 : vector<8x8xf32>
    %cst_18 = arith.constant dense<0.000000e+00> : vector<8xf32>
    %42 = vector.multi_reduction <add>, %41, %cst_18 [1] : vector<8x8xf32> to vector<8xf32>
    %43 = vector.shape_cast %42 : vector<8xf32> to vector<8x1xf32>
    %44 = vector.extract_strided_slice %13 {offsets = [0, 8], sizes = [8, 8], strides = [1, 1]} : vector<8x32xf32> to vector<8x8xf32>
    %cst_19 = arith.constant dense<0.000000e+00> : vector<8x8xf32>
    %45 = tpu.matmul %41, %44, %cst_19 {dimension_numbers = #tpu.dot_dimension_numbers<[1], [0], [0], [1], [0, 0, 1, 1], [], []>} : vector<8x8xf32>, vector<8x8xf32>, vector<8x8xf32> -> vector<8x8xf32>
    %46 = tpu.reciprocal %43 : vector<8x1xf32> -> vector<8x1xf32>
    %47 = vector.broadcast %46 : vector<8x1xf32> to vector<8x8xf32>
    %48 = arith.mulf %45, %47 : vector<8x8xf32>
    %c0_20 = arith.constant 0 : index
    %c8 = arith.constant 8 : index
    %49 = vector.load %arg17[%c0_20, %c8] : memref<8x32xf32, #tpu.memory_space<vmem>>, vector<8x8xf32>
    tpu.vector_store %arg17[%c0_20, %c8], %48 {strides = array<i32>} : memref<8x32xf32, #tpu.memory_space<vmem>>, vector<8x8xf32>,
    %50 = vector.extract_strided_slice %11 {offsets = [0, 16], sizes = [8, 8], strides = [1, 1]} : vector<8x32xf32> to vector<8x8xf32>
    %51 = vector.extract_strided_slice %12 {offsets = [0, 16], sizes = [8, 8], strides = [1, 1]} : vector<8x32xf32> to vector<8x8xf32>
    %cst_21 = arith.constant dense<0.000000e+00> : vector<8x8xf32>
    %52 = tpu.matmul %50, %51, %cst_21 {dimension_numbers = #tpu.dot_dimension_numbers<[1], [1], [0], [0], [0, 0, 1, 0], [], []>} : vector<8x8xf32>, vector<8x8xf32>, vector<8x8xf32> -> vector<8x8xf32>
    %cst_22 = arith.constant 0.353553385 : f32
    %53 = vector.broadcast %cst_22 : f32 to vector<8x8xf32>
    %54 = arith.mulf %52, %53 : vector<8x8xf32>
    %cst_23 = arith.constant dense<0xFF800000> : vector<8xf32>
    %55 = vector.multi_reduction <maximumf>, %54, %cst_23 [1] : vector<8x8xf32> to vector<8xf32>
    %56 = vector.shape_cast %55 : vector<8xf32> to vector<8x1xf32>
    %57 = vector.broadcast %56 : vector<8x1xf32> to vector<8x8xf32>
    %58 = arith.subf %54, %57 : vector<8x8xf32>
    %59 = math.exp %58 : vector<8x8xf32>
    %cst_24 = arith.constant dense<0.000000e+00> : vector<8xf32>
    %60 = vector.multi_reduction <add>, %59, %cst_24 [1] : vector<8x8xf32> to vector<8xf32>
    %61 = vector.shape_cast %60 : vector<8xf32> to vector<8x1xf32>
    %62 = vector.extract_strided_slice %13 {offsets = [0, 16], sizes = [8, 8], strides = [1, 1]} : vector<8x32xf32> to vector<8x8xf32>
    %cst_25 = arith.constant dense<0.000000e+00> : vector<8x8xf32>
    %63 = tpu.matmul %59, %62, %cst_25 {dimension_numbers = #tpu.dot_dimension_numbers<[1], [0], [0], [1], [0, 0, 1, 1], [], []>} : vector<8x8xf32>, vector<8x8xf32>, vector<8x8xf32> -> vector<8x8xf32>
    %64 = tpu.reciprocal %61 : vector<8x1xf32> -> vector<8x1xf32>
    %65 = vector.broadcast %64 : vector<8x1xf32> to vector<8x8xf32>
    %66 = arith.mulf %63, %65 : vector<8x8xf32>
    %c0_26 = arith.constant 0 : index
    %c16 = arith.constant 16 : index
    %67 = vector.load %arg17[%c0_26, %c16] : memref<8x32xf32, #tpu.memory_space<vmem>>, vector<8x8xf32>
    tpu.vector_store %arg17[%c0_26, %c16], %66 {strides = array<i32>} : memref<8x32xf32, #tpu.memory_space<vmem>>, vector<8x8xf32>,
    %68 = vector.extract_strided_slice %11 {offsets = [0, 24], sizes = [8, 8], strides = [1, 1]} : vector<8x32xf32> to vector<8x8xf32>
    %69 = vector.extract_strided_slice %12 {offsets = [0, 24], sizes = [8, 8], strides = [1, 1]} : vector<8x32xf32> to vector<8x8xf32>
    %cst_27 = arith.constant dense<0.000000e+00> : vector<8x8xf32>
    %70 = tpu.matmul %68, %69, %cst_27 {dimension_numbers = #tpu.dot_dimension_numbers<[1], [1], [0], [0], [0, 0, 1, 0], [], []>} : vector<8x8xf32>, vector<8x8xf32>, vector<8x8xf32> -> vector<8x8xf32>
    %cst_28 = arith.constant 0.353553385 : f32
    %71 = vector.broadcast %cst_28 : f32 to vector<8x8xf32>
    %72 = arith.mulf %70, %71 : vector<8x8xf32>
    %cst_29 = arith.constant dense<0xFF800000> : vector<8xf32>
    %73 = vector.multi_reduction <maximumf>, %72, %cst_29 [1] : vector<8x8xf32> to vector<8xf32>
    %74 = vector.shape_cast %73 : vector<8xf32> to vector<8x1xf32>
    %75 = vector.broadcast %74 : vector<8x1xf32> to vector<8x8xf32>
    %76 = arith.subf %72, %75 : vector<8x8xf32>
    %77 = math.exp %76 : vector<8x8xf32>
    %cst_30 = arith.constant dense<0.000000e+00> : vector<8xf32>
    %78 = vector.multi_reduction <add>, %77, %cst_30 [1] : vector<8x8xf32> to vector<8xf32>
    %79 = vector.shape_cast %78 : vector<8xf32> to vector<8x1xf32>
    %80 = vector.extract_strided_slice %13 {offsets = [0, 24], sizes = [8, 8], strides = [1, 1]} : vector<8x32xf32> to vector<8x8xf32>
    %cst_31 = arith.constant dense<0.000000e+00> : vector<8x8xf32>
    %81 = tpu.matmul %77, %80, %cst_31 {dimension_numbers = #tpu.dot_dimension_numbers<[1], [0], [0], [1], [0, 0, 1, 1], [], []>} : vector<8x8xf32>, vector<8x8xf32>, vector<8x8xf32> -> vector<8x8xf32>
    %82 = tpu.reciprocal %79 : vector<8x1xf32> -> vector<8x1xf32>
    %83 = vector.broadcast %82 : vector<8x1xf32> to vector<8x8xf32>
    %84 = arith.mulf %81, %83 : vector<8x8xf32>
    %c0_32 = arith.constant 0 : index
    %c24 = arith.constant 24 : index
    %85 = vector.load %arg17[%c0_32, %c24] : memref<8x32xf32, #tpu.memory_space<vmem>>, vector<8x8xf32>
    tpu.vector_store %arg17[%c0_32, %c24], %84 {strides = array<i32>} : memref<8x32xf32, #tpu.memory_space<vmem>>, vector<8x8xf32>,
    %c0_33 = arith.constant 0 : index
    %c0_34 = arith.constant 0 : index
    %86 = vector.load %arg17[%c0_33, %c0_34] : memref<8x32xf32, #tpu.memory_space<vmem>>, vector<8x32xf32>
    %c0_35 = arith.constant 0 : index
    %c0_36 = arith.constant 0 : index
    %c0_37 = arith.constant 0 : index
    %87 = vector.load %arg5[%c0_35, %c0_36, %c0_37] : memref<1x32x32xf32, #tpu.memory_space<vmem>>, vector<1x32x32xf32>
    %88 = vector.shape_cast %87 : vector<1x32x32xf32> to vector<32x32xf32>
    %cst_38 = arith.constant dense<0.000000e+00> : vector<8x32xf32>
    %89 = tpu.matmul %86, %88, %cst_38 {dimension_numbers = #tpu.dot_dimension_numbers<[1], [0], [0], [1], [0, 0, 1, 1], [], []>} : vector<8x32xf32>, vector<32x32xf32>, vector<8x32xf32> -> vector<8x32xf32>
    %c0_39 = arith.constant 0 : index
    %c0_40 = arith.constant 0 : index
    %c0_41 = arith.constant 0 : index
    %90 = vector.load %arg6[%c0_39, %c0_40, %c0_41] : memref<1x1x32xf32, #tpu.memory_space<vmem>>, vector<1x1x32xf32>
    %91 = vector.shape_cast %90 : vector<1x1x32xf32> to vector<1x32xf32>
    %92 = vector.broadcast %91 : vector<1x32xf32> to vector<8x32xf32>
    %93 = arith.addf %89, %92 : vector<8x32xf32>
    %94 = arith.addf %93, %3 : vector<8x32xf32>
    %c0_42 = arith.constant 0 : index
    %c0_43 = arith.constant 0 : index
    %c0_44 = arith.constant 0 : index
    %95 = vector.load %arg7[%c0_42, %c0_43, %c0_44] : memref<1x1x32xf32, #tpu.memory_space<vmem>>, vector<1x1x32xf32>
    %96 = vector.shape_cast %95 : vector<1x1x32xf32> to vector<1x32xf32>
    %c0_45 = arith.constant 0 : index
    %c0_46 = arith.constant 0 : index
    %c0_47 = arith.constant 0 : index
    %97 = vector.load %arg8[%c0_45, %c0_46, %c0_47] : memref<1x1x32xf32, #tpu.memory_space<vmem>>, vector<1x1x32xf32>
    %98 = vector.shape_cast %97 : vector<1x1x32xf32> to vector<1x32xf32>
    %cst_48 = arith.constant dense<0.000000e+00> : vector<8xf32>
    %99 = vector.multi_reduction <add>, %94, %cst_48 [1] : vector<8x32xf32> to vector<8xf32>
    %100 = vector.shape_cast %99 : vector<8xf32> to vector<8x1xf32>
    %cst_49 = arith.constant 3.200000e+01 : f32
    %101 = vector.broadcast %cst_49 : f32 to vector<8x1xf32>
    %102 = arith.divf %100, %101 : vector<8x1xf32>
    %103 = vector.broadcast %102 : vector<8x1xf32> to vector<8x32xf32>
    %104 = arith.subf %94, %103 : vector<8x32xf32>
    %105 = arith.mulf %104, %104 : vector<8x32xf32>
    %cst_50 = arith.constant dense<0.000000e+00> : vector<8xf32>
    %106 = vector.multi_reduction <add>, %105, %cst_50 [1] : vector<8x32xf32> to vector<8xf32>
    %107 = vector.shape_cast %106 : vector<8xf32> to vector<8x1xf32>
    %cst_51 = arith.constant 3.200000e+01 : f32
    %108 = vector.broadcast %cst_51 : f32 to vector<8x1xf32>
    %109 = arith.divf %107, %108 : vector<8x1xf32>
    %cst_52 = arith.constant 9.99999974E-6 : f32
    %110 = vector.broadcast %cst_52 : f32 to vector<8x1xf32>
    %111 = arith.addf %109, %110 : vector<8x1xf32>
    %112 = math.rsqrt %111 : vector<8x1xf32>
    %113 = vector.broadcast %112 : vector<8x1xf32> to vector<8x32xf32>
    %114 = arith.mulf %104, %113 : vector<8x32xf32>
    %115 = vector.broadcast %96 : vector<1x32xf32> to vector<8x32xf32>
    %116 = arith.mulf %114, %115 : vector<8x32xf32>
    %117 = vector.broadcast %98 : vector<1x32xf32> to vector<8x32xf32>
    %118 = arith.addf %116, %117 : vector<8x32xf32>
    %c0_53 = arith.constant 0 : index
    %c0_54 = arith.constant 0 : index
    %c0_55 = arith.constant 0 : index
    %119 = vector.load %arg9[%c0_53, %c0_54, %c0_55] : memref<1x32x64xf32, #tpu.memory_space<vmem>>, vector<1x32x64xf32>
    %120 = vector.shape_cast %119 : vector<1x32x64xf32> to vector<32x64xf32>
    %cst_56 = arith.constant dense<0.000000e+00> : vector<8x64xf32>
    %121 = tpu.matmul %118, %120, %cst_56 {dimension_numbers = #tpu.dot_dimension_numbers<[1], [0], [0], [1], [0, 0, 1, 1], [], []>} : vector<8x32xf32>, vector<32x64xf32>, vector<8x64xf32> -> vector<8x64xf32>
    %c0_57 = arith.constant 0 : index
    %c0_58 = arith.constant 0 : index
    %c0_59 = arith.constant 0 : index
    %122 = vector.load %arg10[%c0_57, %c0_58, %c0_59] : memref<1x1x64xf32, #tpu.memory_space<vmem>>, vector<1x1x64xf32>
    %123 = vector.shape_cast %122 : vector<1x1x64xf32> to vector<1x64xf32>
    %124 = vector.broadcast %123 : vector<1x64xf32> to vector<8x64xf32>
    %125 = arith.addf %121, %124 : vector<8x64xf32>
    %cst_60 = arith.constant 5.000000e-01 : f32
    %126 = vector.broadcast %cst_60 : f32 to vector<8x64xf32>
    %127 = arith.mulf %125, %126 : vector<8x64xf32>
    %cst_61 = arith.constant 0.707106769 : f32
    %128 = vector.broadcast %cst_61 : f32 to vector<8x64xf32>
    %129 = arith.mulf %125, %128 : vector<8x64xf32>
    %130 = math.absf %129 : vector<8x64xf32>
    %cst_62 = arith.constant 0.327591091 : f32
    %131 = vector.broadcast %cst_62 : f32 to vector<8x64xf32>
    %132 = arith.mulf %131, %130 : vector<8x64xf32>
    %cst_63 = arith.constant 1.000000e+00 : f32
    %133 = vector.broadcast %cst_63 : f32 to vector<8x64xf32>
    %134 = arith.addf %133, %132 : vector<8x64xf32>
    %cst_64 = arith.constant 1.000000e+00 : f32
    %135 = vector.broadcast %cst_64 : f32 to vector<8x64xf32>
    %136 = arith.divf %135, %134 : vector<8x64xf32>
    %cst_65 = arith.constant 1.06140542 : f32
    %137 = vector.broadcast %cst_65 : f32 to vector<8x64xf32>
    %138 = arith.mulf %137, %136 : vector<8x64xf32>
    %cst_66 = arith.constant -1.45315206 : f32
    %139 = vector.broadcast %cst_66 : f32 to vector<8x64xf32>
    %140 = arith.addf %138, %139 : vector<8x64xf32>
    %141 = arith.mulf %140, %136 : vector<8x64xf32>
    %cst_67 = arith.constant 1.42141378 : f32
    %142 = vector.broadcast %cst_67 : f32 to vector<8x64xf32>
    %143 = arith.addf %141, %142 : vector<8x64xf32>
    %144 = arith.mulf %143, %136 : vector<8x64xf32>
    %cst_68 = arith.constant -0.284496725 : f32
    %145 = vector.broadcast %cst_68 : f32 to vector<8x64xf32>
    %146 = arith.addf %144, %145 : vector<8x64xf32>
    %147 = arith.mulf %146, %136 : vector<8x64xf32>
    %cst_69 = arith.constant 0.254829586 : f32
    %148 = vector.broadcast %cst_69 : f32 to vector<8x64xf32>
    %149 = arith.addf %147, %148 : vector<8x64xf32>
    %150 = arith.mulf %149, %136 : vector<8x64xf32>
    %cst_70 = arith.constant 0.000000e+00 : f32
    %151 = vector.broadcast %cst_70 : f32 to vector<8x64xf32>
    %152 = arith.subf %151, %130 : vector<8x64xf32>
    %153 = arith.mulf %152, %130 : vector<8x64xf32>
    %154 = math.exp %153 : vector<8x64xf32>
    %155 = arith.mulf %150, %154 : vector<8x64xf32>
    %cst_71 = arith.constant 1.000000e+00 : f32
    %156 = vector.broadcast %cst_71 : f32 to vector<8x64xf32>
    %157 = arith.subf %156, %155 : vector<8x64xf32>
    %cst_72 = arith.constant 0.000000e+00 : f32
    %158 = vector.broadcast %cst_72 : f32 to vector<8x64xf32>
    %159 = arith.cmpf oge, %129, %158 : vector<8x64xf32>
    %cst_73 = arith.constant 0.000000e+00 : f32
    %160 = vector.broadcast %cst_73 : f32 to vector<8x64xf32>
    %161 = arith.subf %160, %157 : vector<8x64xf32>
    %162 = arith.select %159, %157, %161 : vector<8x64xi1>, vector<8x64xf32>
    %cst_74 = arith.constant 1.000000e+00 : f32
    %163 = vector.broadcast %cst_74 : f32 to vector<8x64xf32>
    %164 = arith.addf %163, %162 : vector<8x64xf32>
    %165 = arith.mulf %127, %164 : vector<8x64xf32>
    %c0_75 = arith.constant 0 : index
    %c0_76 = arith.constant 0 : index
    %c0_77 = arith.constant 0 : index
    %166 = vector.load %arg11[%c0_75, %c0_76, %c0_77] : memref<1x64x32xf32, #tpu.memory_space<vmem>>, vector<1x64x32xf32>
    %167 = vector.shape_cast %166 : vector<1x64x32xf32> to vector<64x32xf32>
    %cst_78 = arith.constant dense<0.000000e+00> : vector<8x32xf32>
    %168 = tpu.matmul %165, %167, %cst_78 {dimension_numbers = #tpu.dot_dimension_numbers<[1], [0], [0], [1], [0, 0, 1, 1], [], []>} : vector<8x64xf32>, vector<64x32xf32>, vector<8x32xf32> -> vector<8x32xf32>
    %c0_79 = arith.constant 0 : index
    %c0_80 = arith.constant 0 : index
    %c0_81 = arith.constant 0 : index
    %169 = vector.load %arg12[%c0_79, %c0_80, %c0_81] : memref<1x1x32xf32, #tpu.memory_space<vmem>>, vector<1x1x32xf32>
    %170 = vector.shape_cast %169 : vector<1x1x32xf32> to vector<1x32xf32>
    %171 = vector.broadcast %170 : vector<1x32xf32> to vector<8x32xf32>
    %172 = arith.addf %168, %171 : vector<8x32xf32>
    %173 = arith.addf %172, %118 : vector<8x32xf32>
    %c0_82 = arith.constant 0 : index
    %c0_83 = arith.constant 0 : index
    %c0_84 = arith.constant 0 : index
    %174 = vector.load %arg13[%c0_82, %c0_83, %c0_84] : memref<1x1x32xf32, #tpu.memory_space<vmem>>, vector<1x1x32xf32>
    %175 = vector.shape_cast %174 : vector<1x1x32xf32> to vector<1x32xf32>
    %c0_85 = arith.constant 0 : index
    %c0_86 = arith.constant 0 : index
    %c0_87 = arith.constant 0 : index
    %176 = vector.load %arg14[%c0_85, %c0_86, %c0_87] : memref<1x1x32xf32, #tpu.memory_space<vmem>>, vector<1x1x32xf32>
    %177 = vector.shape_cast %176 : vector<1x1x32xf32> to vector<1x32xf32>
    %cst_88 = arith.constant dense<0.000000e+00> : vector<8xf32>
    %178 = vector.multi_reduction <add>, %173, %cst_88 [1] : vector<8x32xf32> to vector<8xf32>
    %179 = vector.shape_cast %178 : vector<8xf32> to vector<8x1xf32>
    %cst_89 = arith.constant 3.200000e+01 : f32
    %180 = vector.broadcast %cst_89 : f32 to vector<8x1xf32>
    %181 = arith.divf %179, %180 : vector<8x1xf32>
    %182 = vector.broadcast %181 : vector<8x1xf32> to vector<8x32xf32>
    %183 = arith.subf %173, %182 : vector<8x32xf32>
    %184 = arith.mulf %183, %183 : vector<8x32xf32>
    %cst_90 = arith.constant dense<0.000000e+00> : vector<8xf32>
    %185 = vector.multi_reduction <add>, %184, %cst_90 [1] : vector<8x32xf32> to vector<8xf32>
    %186 = vector.shape_cast %185 : vector<8xf32> to vector<8x1xf32>
    %cst_91 = arith.constant 3.200000e+01 : f32
    %187 = vector.broadcast %cst_91 : f32 to vector<8x1xf32>
    %188 = arith.divf %186, %187 : vector<8x1xf32>
    %cst_92 = arith.constant 9.99999974E-6 : f32
    %189 = vector.broadcast %cst_92 : f32 to vector<8x1xf32>
    %190 = arith.addf %188, %189 : vector<8x1xf32>
    %191 = math.rsqrt %190 : vector<8x1xf32>
    %192 = vector.broadcast %191 : vector<8x1xf32> to vector<8x32xf32>
    %193 = arith.mulf %183, %192 : vector<8x32xf32>
    %194 = vector.broadcast %175 : vector<1x32xf32> to vector<8x32xf32>
    %195 = arith.mulf %193, %194 : vector<8x32xf32>
    %196 = vector.broadcast %177 : vector<1x32xf32> to vector<8x32xf32>
    %197 = arith.addf %195, %196 : vector<8x32xf32>
    %c0_93 = arith.constant 0 : index
    %c0_94 = arith.constant 0 : index
    %198 = vector.load %arg16[%c0_93, %c0_94] : memref<8x32xf32, #tpu.memory_space<vmem>>, vector<8x32xf32>
    tpu.vector_store %arg16[%c0_93, %c0_94], %197 {strides = array<i32>} : memref<8x32xf32, #tpu.memory_space<vmem>>, vector<8x32xf32>,
    %c1_i32 = arith.constant 1 : i32
    %199 = arith.cmpi eq, %arg1, %c1_i32 : i32
    %200 = arith.extui %199 : i1 to i32
    %c0_i32_95 = arith.constant 0 : i32
    %201 = arith.cmpi ne, %200, %c0_i32_95 : i32
    scf.if %201 {
      %c0_96 = arith.constant 0 : index
      %c0_97 = arith.constant 0 : index
      %c0_98 = arith.constant 0 : index
      %202 = vector.load %arg15[%c0_96, %c0_97, %c0_98] : memref<1x8x32xf32, #tpu.memory_space<vmem>>, vector<1x8x32xf32>
      %203 = vector.shape_cast %202 : vector<1x8x32xf32> to vector<8x32xf32>
      %204 = vector.shape_cast %197 : vector<8x32xf32> to vector<1x8x32xf32>
      tpu.vector_store %arg15[%c0_96, %c0_97, %c0_98], %204 {strides = array<i32>} : memref<1x8x32xf32, #tpu.memory_space<vmem>>, vector<1x8x32xf32>,
    } else {
    }
    return
  }
  func.func @transform_0(%arg0: i32, %arg1: i32) -> (i32, i32, i32) {
    %c0_i32 = arith.constant 0 : i32
    %c0_i32_0 = arith.constant 0 : i32
    %c0_i32_1 = arith.constant 0 : i32
    return %arg0, %c0_i32, %c0_i32_0 : i32, i32, i32
  }
  func.func @transform_1(%arg0: i32, %arg1: i32) -> (i32, i32, i32) {
    %c0_i32 = arith.constant 0 : i32
    %c0_i32_0 = arith.constant 0 : i32
    %c0_i32_1 = arith.constant 0 : i32
    return %arg1, %c0_i32, %c0_i32_0 : i32, i32, i32
  }
  func.func @transform_2(%arg0: i32, %arg1: i32) -> (i32, i32, i32) {
    %c0_i32 = arith.constant 0 : i32
    %c0_i32_0 = arith.constant 0 : i32
    %c0_i32_1 = arith.constant 0 : i32
    return %arg1, %c0_i32, %c0_i32_0 : i32, i32, i32
  }
  func.func @transform_3(%arg0: i32, %arg1: i32) -> (i32, i32, i32) {
    %c0_i32 = arith.constant 0 : i32
    %c0_i32_0 = arith.constant 0 : i32
    %c0_i32_1 = arith.constant 0 : i32
    return %arg1, %c0_i32, %c0_i32_0 : i32, i32, i32
  }
  func.func @transform_4(%arg0: i32, %arg1: i32) -> (i32, i32, i32) {
    %c0_i32 = arith.constant 0 : i32
    %c0_i32_0 = arith.constant 0 : i32
    %c0_i32_1 = arith.constant 0 : i32
    return %arg1, %c0_i32, %c0_i32_0 : i32, i32, i32
  }
  func.func @transform_5(%arg0: i32, %arg1: i32) -> (i32, i32, i32) {
    %c0_i32 = arith.constant 0 : i32
    %c0_i32_0 = arith.constant 0 : i32
    %c0_i32_1 = arith.constant 0 : i32
    return %arg1, %c0_i32, %c0_i32_0 : i32, i32, i32
  }
  func.func @transform_6(%arg0: i32, %arg1: i32) -> (i32, i32, i32) {
    %c0_i32 = arith.constant 0 : i32
    %c0_i32_0 = arith.constant 0 : i32
    %c0_i32_1 = arith.constant 0 : i32
    return %arg1, %c0_i32, %c0_i32_0 : i32, i32, i32
  }
  func.func @transform_7(%arg0: i32, %arg1: i32) -> (i32, i32, i32) {
    %c0_i32 = arith.constant 0 : i32
    %c0_i32_0 = arith.constant 0 : i32
    %c0_i32_1 = arith.constant 0 : i32
    return %arg1, %c0_i32, %c0_i32_0 : i32, i32, i32
  }
  func.func @transform_8(%arg0: i32, %arg1: i32) -> (i32, i32, i32) {
    %c0_i32 = arith.constant 0 : i32
    %c0_i32_0 = arith.constant 0 : i32
    %c0_i32_1 = arith.constant 0 : i32
    return %arg1, %c0_i32, %c0_i32_0 : i32, i32, i32
  }
  func.func @transform_9(%arg0: i32, %arg1: i32) -> (i32, i32, i32) {
    %c0_i32 = arith.constant 0 : i32
    %c0_i32_0 = arith.constant 0 : i32
    %c0_i32_1 = arith.constant 0 : i32
    return %arg1, %c0_i32, %c0_i32_0 : i32, i32, i32
  }
  func.func @transform_10(%arg0: i32, %arg1: i32) -> (i32, i32, i32) {
    %c0_i32 = arith.constant 0 : i32
    %c0_i32_0 = arith.constant 0 : i32
    %c0_i32_1 = arith.constant 0 : i32
    return %arg1, %c0_i32, %c0_i32_0 : i32, i32, i32
  }
  func.func @transform_11(%arg0: i32, %arg1: i32) -> (i32, i32, i32) {
    %c0_i32 = arith.constant 0 : i32
    %c0_i32_0 = arith.constant 0 : i32
    %c0_i32_1 = arith.constant 0 : i32
    return %arg1, %c0_i32, %c0_i32_0 : i32, i32, i32
  }
  func.func @transform_12(%arg0: i32, %arg1: i32) -> (i32, i32, i32) {
    %c0_i32 = arith.constant 0 : i32
    %c0_i32_0 = arith.constant 0 : i32
    %c0_i32_1 = arith.constant 0 : i32
    return %arg1, %c0_i32, %c0_i32_0 : i32, i32, i32
  }
  func.func @transform_13(%arg0: i32, %arg1: i32) -> (i32, i32, i32) {
    %c0_i32 = arith.constant 0 : i32
    %c0_i32_0 = arith.constant 0 : i32
    %c0_i32_1 = arith.constant 0 : i32
    return %arg0, %c0_i32, %c0_i32_0 : i32, i32, i32
  }
}

</mosaic_0001>

<bundles_post_ra>
// kernel: bert_with_classify_pallas.5
= control target key start
LH: loop header
LB: loop body
LE: loop exit
PB: predicated region body
PF: predicated region fallthrough
CT: control target
= control target key end

     0   :  { %s1417_s0 = inlined_call_operand.vmem [shape: f32[2,8,32], index: 0, kind: input, shape index: {}]   ;;  %s1418_s1 = inlined_call_operand.vmem [shape: f32[32,32], index: 1, kind: input, shape index: {}]   ;;  %s1419_s2 = inlined_call_operand.vmem [shape: f32[1,32], index: 2, kind: input, shape index: {}]   ;;  %s1420_s3 = inlined_call_operand.vmem [shape: f32[1,32], index: 3, kind: input, shape index: {}]   ;;  %s1421_s4 = inlined_call_operand.vmem [shape: f32[1,32], index: 4, kind: input, shape index: {}]   ;;  %s1422_s5 = inlined_call_operand.vmem [shape: f32[32,64], index: 5, kind: input, shape index: {}]   ;;  %s1423_s6 = inlined_call_operand.vmem [shape: f32[1,64], index: 6, kind: input, shape index: {}]   ;;  %s1424_s7 = inlined_call_operand.vmem [shape: f32[32,4], index: 7, kind: input, shape index: {}]   ;;  %s1425_s8 = inlined_call_operand.vmem [shape: f32[1,4], index: 8, kind: input, shape index: {}]   ;;  %s1426_s9 = inlined_call_operand.hbm [shape: f32[2,8,64], index: 9, kind: output, shape index: {0}]   ;;  %s1427_s10 = inlined_call_operand.hbm [shape: f32[2,1,4], index: 10, kind: output, shape index: {1}]  }
   0x1   :  { %1428 = sst [smem:[#allocation9_spill]] %s1417_s0 }
   0x2   :  { %1429 = sst [smem:[#allocation10_spill]] %s1418_s1 }
   0x3   :  { %1430 = sst [smem:[#allocation11_spill]] %s1419_s2 }
   0x4   :  { %16 = vsyncpa [#allocation4], 0 }
   0x5   :  { %18 = vsyncpa [#allocation4 + $0x1], 0 }
   0x6   :  { %19 = vsyncpa [#allocation6], 0 }
   0x7   :  { %21 = vsyncpa [#allocation6 + $0x1], 0  ;;  %s1206_s13 = smov 0   ;;  %s1208_s14 = smov 0  }
   0x8   :  { %s1210_s15 = smov 0   ;;  %s1212_s16 = smov 0  }
   0x9   :  { %s1214_s17 = smov 0   ;;  %s1216_s18 = smov 0  }
   0xa LB: > { %s878_s19 = sadd.s32 4294967295, %s1144_s18   ;;  %s879_s20 = sadd.s32 4294967294, %s1144_s18   ;;  %s1144_s18 = sphi %s1216_s18, %s27_s18   ;;  %s1140_s17 = sphi %s1214_s17, %s1440_s17   ;;  %s1136_s16 = sphi %s1212_s16, %s1439_s16   ;;  %s1132_s15 = sphi %s1210_s15, %s1438_s15   ;;  %s1128_s14 = sphi %s1208_s14, %s1437_s14   ;;  %s1124_s13 = sphi %s1206_s13, %s1436_s13  }
   0xb   : > { %s39_s21 = sadd.s32 1, %s1140_s17  ;;  %s252_s22 = sadd.s32 1, %s1132_s15 }
   0xc   : > { %p41_p0 = scmp.ge.s32.totalorder %s39_s21, 2  ;;  %p262_p1 = scmp.ne.s32.totalorder %s1132_s15, %s1128_s14 }
   0xd   : > { %p263_p2 = scmp.eq.s32.totalorder %s878_s19, 1  ;;  %p268_p3 = scmp.ne.s32.totalorder %s1128_s14, %s1124_s13 }
   0xe   : > { %s1442_s21 = smov (%p41_p0, %s39_s21), 0  ;;  %p269_p5 = scmp.eq.s32.totalorder %s879_s20, 1 }
   0xf   : > { %p1246_p4 = por %p263_p2, %p262_p1  ;;  %s247_s24 = ssub.s32 %s1140_s17, %s1442_s21 }
  0x10   : > { %p884_p6 = scmp.ge.s32.totalorder %s1144_s18, 1  ;;  %p250_p7 = scmp.eq.s32.totalorder %s247_s24, 0 }
  0x11   : > { %p1253_p8 = por %p269_p5, %p268_p3  ;;  %p351_p9 = scmp.lt.s32.totalorder %s1144_s18, 3 }
  0x12   : > { %s1259_s26 = scalar_select %p250_p7, %s1132_s15, %s252_s22  }
  0x13   : > { %p352_p10 = pnand %p884_p6, %p351_p9 }
  0x14   : > { %s1433_s1 = sld [smem:[#allocation10_spill]] (!%p352_p10)  ;;  %v1146_v3 = vmov (!%p352_p10), 0.0|0.0   ;;  %vm1147_vm0 = vmmov (!%p352_p10), 0   ;;  %v1148_v6 = vmov (!%p352_p10), 0.0   ;;  %p399_p11 = scmp.lt.s32.totalorder (!%p352_p10), %s1136_s16, 1  ;;  %vm426_vm1 = vcmask (!%p352_p10), 261120  }
  0x15   : > { %355 = sbr.rel (%p352_p10) target bundleno = 847 (0x34f), region = 56  ;;  %947 = vmatprep.subr.bf16.mxu0 (!%p352_p10), %v1146_v3  ;;  %922 = vmatprep.mubr.msk.f32.mxu0 (!%p352_p10), %vm1147_vm0, %v1148_v6  ;;  %s1434_s0 = sld [smem:[#allocation9_spill]] (!%p352_p10)  ;;  %v558_v44 = vld [vmem:[%s1424_s7] sm:$0xff] (!%p352_p10)  ;;  %v559_v45 = vld [vmem:[%s1424_s7 + $0x8] sm:$0xff] (!%p352_p10)  ;;  %v560_v50 = vld [vmem:[%s1424_s7 + $0x10] sm:$0xff] (!%p352_p10)  ;;  %vm633_vm3 = vcmask (!%p352_p10), 24576  }
  0x16   : > { %953 = vmatprep.subr.bf16.mxu1 (!%p352_p10), %v1146_v3  ;;  %933 = vmatprep.mubr.msk.f32.mxu1 (!%p352_p10), %vm1147_vm0, %v1148_v6  ;;  %s1435_s2 = sld [smem:[#allocation11_spill]] (!%p352_p10)  ;;  %v954_v46 = vpack.c.bf16 (!%p352_p10), %v559_v45, %v558_v44  ;;  %v636_v47 = vld [vmem:[%s1422_s5] sm:$0xff] (!%p352_p10)  ;;  %v637_v48 = vld [vmem:[%s1422_s5 + $0x8] sm:$0xff] (!%p352_p10)  ;;  %v561_v51 = vld [vmem:[%s1424_s7 + $0x18] sm:$0xff] (!%p352_p10)  ;;  %s1334_s20 = sand.u32 (!%p352_p10), 1, %s1128_s14  }
  0x17   : > { %v960_v49 = vpack.c.bf16 (!%p352_p10), %v637_v48, %v636_v47  ;;  %v638_v52 = vld [vmem:[%s1422_s5 + $0x10] sm:$0xff] (!%p352_p10)  ;;  %v957_v53 = vpack.c.bf16 (!%p352_p10), %v561_v51, %v560_v50  ;;  %v639_v54 = vld [vmem:[%s1422_s5 + $0x18] sm:$0xff] (!%p352_p10)  ;;  %v889_v60 = vld [vmem:[%s1420_s3] ss:$0 sm:$0xff] (!%p352_p10)  ;;  %s729_s11 = scalar_lea.sflag (!%p352_p10), [#allocation6], %s1334_s20  ;;  %s1149_s19 = smov (!%p352_p10), [#allocation5]  }
  0x18   : > { %955 = vmatpush3.bf16.msra.mxu1 (!%p352_p10), %v954_v46  ;;  %v963_v55 = vpack.c.bf16 (!%p352_p10), %v639_v54, %v638_v52  ;;  %v890_v62 = vld [vmem:[%s1421_s4] ss:$0 sm:$0xff] (!%p352_p10) }
  0x19   : > { %956 = vmatprep.subr.bf16.mxu1 (!%p352_p10), %v1146_v3 }
  0x1a   : > { %v415_v0 = vld [vmem:[%s1433_s1] sm:$0xff] (!%p352_p10)  ;;  %v416_v1 = vld [vmem:[%s1433_s1 + $0x8] sm:$0xff] (!%p352_p10)  ;;  %v417_v2 = vld [vmem:[%s1433_s1 + $0x10] sm:$0xff] (!%p352_p10) }
  0x1b   : > { %v948_v4 = vpack.c.bf16 (!%p352_p10), %v416_v1, %v415_v0  ;;  %v418_v5 = vld [vmem:[%s1433_s1 + $0x18] sm:$0xff] (!%p352_p10) }
  0x1c   : > { %v951_v7 = vpack.c.bf16 %v418_v5, %v417_v2  ;;  %s400_s22 = scalar_select %p399_p11, %s1136_s16, 1  ;;  %v887_v9 = vld [vmem:[%s1435_s2] ss:$0 sm:$0xff]  ;;  %958 = vmatpush3.bf16.msra.mxu1 %v957_v53 }
  0x1d   : > { %949 = vmatpush3.bf16.msra.mxu0 %v948_v4  ;;  %v562_v2 = vld [vmem:[%s1425_s8] sm:$0x1] }
  0x1e   : > { %950 = vmatprep.subr.bf16.mxu0 %v1146_v3  ;;  %s886_s24 = sshll.u32 %s400_s22, 3  ;;  %s398_s22 = scalar_lea.vmem [#allocation5], %s1334_s20 }
  0x1f   : > { %s402_s29 = scalar_lea.vmem %s1434_s0, %s886_s24  ;;  %s896_s24 = sshll.u32 %s1136_s16, 4 }
  0x20   : > { %v1283_v8 = vld [vmem:[%s402_s29] sm:$0xff]  ;;  %s755_s27 = sshll.u32 %s398_s22, 4  ;;  %s1341_s30 = scalar_lea.hbm %s1427_s10, %s896_s24  ;;  %s756_s27 = int_to_ptr.vmem [resolvable:$true] %s755_s27 }
  0x21   : > { %952 = vmatpush3.bf16.msra.mxu0 %v951_v7  ;;  %934 = vmatmul.mubr.msk.f32.vlgmr.msra.gmra.mrb[0].mxu1 %vm426_vm1, %v1283_v8  ;;  %s1034_s12 = scalar_lea.vmem %s756_s27, 16  ;;  %s1038_s0 = sshll.u32 %s1149_s19, 4  ;;  %s1039_s0 = int_to_ptr.vmem [resolvable:$false] %s1038_s0 }
  0x22   : > { %959 = vmatprep.subr.bf16.mxu0 %v1146_v3  ;;  %p1035_p12 = scmp.ne.s32.totalorder %s756_s27, %s1034_s12  ;;  %s1040_s1 = scalar_lea.vmem %s1039_s0, 32 }
  0x23   : > { %p1041_p1 = scmp.lt.s32.totalorder %s756_s27, %s1039_s0  ;;  %p1042_p2 = scmp.lt.s32.totalorder %s1040_s1, %s1034_s12 }
  0x24   : > { %923 = vmatmul.mubr.msk.f32.vlgmr.msra.gmra.mrb[0].mxu0 %vm426_vm1, %v1283_v8  ;;  %p1036_p13 = pnand %p1035_p12, %p1246_p4 }
  0x25   : > { %944 = vmatprep.mubr.msk.f32.mxu0 %vm1147_vm0, %v1148_v6  ;;  %961 = vmatpush3.bf16.msra.mxu0 %v960_v49  ;;  %p1043_p3 = por %p1042_p2, %p1041_p1 }
  0x26   : > { %962 = vmatprep.subr.bf16.mxu0 %v1146_v3  ;;  %p1037_p0 = pneg %p1036_p13 }
  0x28   : > { %p1044_p5 = pnand %p1043_p3, %p1037_p0 }
  0x29   : > { %964 = vmatpush3.bf16.msra.mxu0 %v963_v55 }
  0xf4   : > { %v629_v3 = vpop.f32.mrb[0].mxu1 }
  0xf5   : > { %v630_v4 = vadd.f32 %v629_v3, %v562_v2  ;;  %v935_v5 = vpop.f32.mrb[1].mxu1 }
  0xf7   : > { %v496_v10 = vpop.f32.mrb[0].mxu0  ;;  %634 = vst.msk [vmem:[%s398_s22] sm:$0x1] %vm633_vm3, %v630_v4 }
  0xf8   : > { %v497_v11 = vadd.f32 %v887_v9, %v496_v10  ;;  %v924_v12 = vpop.f32.mrb[1].mxu0 }
  0xfa   : > { %v501_v13 = vmul.f32 0.70710677, %v497_v11  ;;  %v500_v35 = vmul.f32 0.5, %v497_v11 }
  0xfc   : > { %v502_v14 = vand.u32 2147483647, %v501_v13  ;;  %vm522_vm2 = vcmp.ge.f32.partialorder %v501_v13, 0.0 }
  0xfe   : > { %v503_v15 = vmul.f32 0.3275911, %v502_v14  ;;  %v516_v17 = vsub.f32 0.0, %v502_v14 }
 0x100   : > { %v504_v16 = vadd.f32 1.0, %v503_v15  ;;  %v517_v19 = vmul.f32 %v516_v17, %v502_v14 }
 0x102   : > { %1028 = vrcp.f32 %v504_v16  ;;  %v518_v22 = vmul.f32 1.442695, %v517_v19 }
 0x104   : > { %1030 = vpow2.f32 %v518_v22 }
 0x10c   : > { %v1029_v18 = vpop.eup %1028 }
 0x10d   : > { %v507_v20 = vmul.f32 1.0614054, %v1029_v18 }
 0x10e   : > { %v1031_v30 = vpop.eup %1030 }
 0x10f   : > { %v508_v21 = vadd.f32 -1.4531521, %v507_v20 }
 0x111   : > { %v509_v23 = vmul.f32 %v1029_v18, %v508_v21 }
 0x113   : > { %v510_v24 = vadd.f32 1.4214138, %v509_v23 }
 0x115   : > { %v511_v25 = vmul.f32 %v1029_v18, %v510_v24 }
 0x117   : > { %v512_v26 = vadd.f32 -0.28449672, %v511_v25 }
 0x119   : > { %v513_v27 = vmul.f32 %v1029_v18, %v512_v26 }
 0x11b   : > { %v514_v28 = vadd.f32 0.2548296, %v513_v27 }
 0x11d   : > { %v515_v29 = vmul.f32 %v1029_v18, %v514_v28 }
 0x11f   : > { %v520_v31 = vmul.f32 %v1031_v30, %v515_v29 }
 0x121   : > { %v521_v32 = vsub.f32 1.0, %v520_v31 }
 0x123   : > { %v523_v33 = vsub.f32 0.0, %v521_v32 }
 0x125   : > { %v524_v34 = vsel %vm522_vm2, %v521_v32, %v523_v33 }
 0x126   : > { %v525_v36 = vadd.f32 1.0, %v524_v34 }
 0x128   : > { %v526_v37 = vmul.f32 %v525_v36, %v500_v35 }
 0x12a   : > { %v529_v38 = vsel %vm426_vm1, %v526_v37, 0.0 }
 0x12b   : > { %530 = vadd.xlane.f32.xlu0 %v529_v38 }
 0x1b8   : > { %v531_v39 = vpop.xlane.xlu0 %530 }
 0x1b9   : > { %v533_v40 = vmul.f32 0.03125, %v531_v39 }
 0x1bb   : > { %v534_v41 = vsub.f32 %v526_v37, %v533_v40 }
 0x1bd   : > { %v535_v42 = vmul.f32 %v534_v41, %v534_v41 }
 0x1bf   : > { %v536_v43 = vsel %vm426_vm1, %v535_v42, 0.0 }
 0x1c0   : > { %537 = vadd.xlane.f32.xlu0 %v536_v43 }
 0x24d   : > { %v538_v56 = vpop.xlane.xlu0 %537 }
 0x24e   : > { %v539_v57 = vmul.f32 0.03125, %v538_v56 }
 0x250   : > { %v540_v58 = vadd.f32 1e-05, %v539_v57 }
 0x252   : > { %1032 = vrsqrt.f32 %v540_v58 }
 0x25c   : > { %v1033_v59 = vpop.eup %1032 }
 0x25d   : > { %v542_v61 = vmul.f32 %v1033_v59, %v534_v41 }
 0x25f   : > { %v549_v63 = vmul.f32 %v889_v60, %v542_v61 }
 0x261   : > { %v556_v0 = vadd.f32 %v890_v62, %v549_v63 }
 0x263   : > { %557 = vst.msk [vmem:[#allocation2] sm:$0xff] %vm426_vm1, %v556_v0 }
 0x26a   : > { %v635_v1 = vld [vmem:[#allocation2] sm:$0xff] }
 0x26b   : > { %945 = vmatmul.mubr.msk.f32.vlgmr.msra.gmra.mrb[2].mxu0 %vm426_vm1, %v635_v1 }
 0x26c   : > { %1047 = shalt.err (!%p1044_p5)
}
 0x26d   : > { %s1048_s22 = scalar_lea.hbm %s1341_s30, 16  ;;  %s1052_s29 = scalar_lea.hbm %s1427_s10, 32 }
 0x26e   : > { %p1049_p6 = scmp.ne.s32.totalorder %s1341_s30, %s1048_s22  ;;  %p1053_p10 = scmp.lt.u32.totalorder %s1341_s30, %s1427_s10 }
 0x26f   : > { %p1054_p11 = scmp.lt.u32.totalorder %s1052_s29, %s1048_s22  ;;  %p1056_p13 = scmp.lt.u32.totalorder %s1048_s22, %s1341_s30 }
 0x270   : > { %p1050_p7 = pnand %p1049_p6, %p1246_p4 }
 0x271   : > { %p1055_p12 = por %p1054_p11, %p1053_p10 }
 0x272   : > { %p1051_p9 = pneg %p1050_p7 }
 0x273   : > { %p1057_p0 = por %p1056_p13, %p1055_p12 }
 0x275   : > { %p1058_p1 = pnand %p1057_p0, %p1051_p9 }
 0x277   : > { %1061 = shalt.err (!%p1058_p1)
}
 0x278   : > { %966 = dma.vmem_to_hbm [thread:$0]  (%p1246_p4), %s756_s27, 16, %s1341_s30, %s729_s11   ;;  %v892_v6 = vld [vmem:[%s1423_s6] ss:$0 sm:$0xff]  ;;  %vm721_vm4 = vcmask 523264  }
 0x279   : > { %s885_s1 = sshll.u32 %s1334_s20, 3  ;;  %s895_s28 = sshll.u32 %s1136_s16, 7 }
 0x27a   : > { %s392_s29 = scalar_lea.vmem [#allocation3], %s885_s1  ;;  %s1369_s2 = scalar_lea.hbm %s1426_s9, %s895_s28 }
 0x27b   : > { %s742_s19 = sshll.u32 %s392_s29, 4  ;;  %s724_s27 = scalar_lea.sflag [#allocation4], %s1334_s20  ;;  %s1371_s19 = int_to_ptr.vmem [resolvable:$true] %s742_s19 }
 0x27c   : > { %s1062_s30 = scalar_lea.vmem %s1371_s19, 128  ;;  %s1150_s16 = smov [#allocation3]  }
 0x27d   : > { %p1063_p2 = scmp.ne.s32.totalorder %s1371_s19, %s1062_s30  ;;  %s1066_s11 = sshll.u32 %s1150_s16, 4  ;;  %s1067_s11 = int_to_ptr.vmem [resolvable:$false] %s1066_s11 }
 0x27e   : > { %s1068_s1 = scalar_lea.vmem %s1067_s11, 256  ;;  %p1069_p6 = scmp.lt.s32.totalorder %s1371_s19, %s1067_s11 }
 0x27f   : > { %p1064_p3 = pnand %p1063_p2, %p1246_p4  ;;  %p1070_p7 = scmp.lt.s32.totalorder %s1068_s1, %s1062_s30 }
 0x281   : > { %p1065_p5 = pneg %p1064_p3  ;;  %p1071_p9 = por %p1070_p7, %p1069_p6 }
 0x283   : > { %p1072_p10 = pnand %p1071_p9, %p1065_p5 }
 0x33e   : > { %v717_v7 = vpop.f32.mrb[2].mxu0 }
 0x33f   : > { %v718_v8 = vadd.f32 %v892_v6, %v717_v7  ;;  %v946_v9 = vpop.f32.mrb[3].mxu0 }
 0x341   : > { %722 = vst.msk [vmem:[%s392_s29] sm:$0xff] %vm721_vm4, %v718_v8 }
 0x342   : > { %1075 = shalt.err (!%p1072_p10)
}
 0x343   : > { %s1076_s20 = scalar_lea.hbm %s1369_s2, 128  ;;  %s1080_s28 = scalar_lea.hbm %s1426_s9, 256 }
 0x344   : > { %p1077_p11 = scmp.ne.s32.totalorder %s1369_s2, %s1076_s20  ;;  %p1081_p0 = scmp.lt.u32.totalorder %s1369_s2, %s1426_s9 }
 0x345   : > { %p1082_p1 = scmp.lt.u32.totalorder %s1080_s28, %s1076_s20  ;;  %p1084_p3 = scmp.lt.u32.totalorder %s1076_s20, %s1369_s2 }
 0x346   : > { %p1078_p12 = pnand %p1077_p11, %p1246_p4 }
 0x347   : > { %p1083_p2 = por %p1082_p1, %p1081_p0 }
 0x348   : > { %p1079_p13 = pneg %p1078_p12 }
 0x349   : > { %p1085_p5 = por %p1084_p3, %p1083_p2 }
 0x34b   : > { %p1086_p6 = pnand %p1085_p5, %p1079_p13 }
 0x34d   : > { %1089 = shalt.err (!%p1086_p6)
}
 0x34e   : > { %965 = dma.vmem_to_hbm [thread:$0]  (%p1246_p4), %s1371_s19, 128, %s1369_s2, %s724_s27  }
 0x34f PF: > { %p976_p7 = scmp.ge.s32.totalorder %s1144_s18, 2  ;;  %s767_s0 = sand.u32 1, %s1124_s13  }
 0x350   : > { %s768_s30 = scalar_lea.sflag [#allocation4], %s767_s0 }
 0x351   : > { %p970_p9 = pnand %p976_p7, %p1253_p8 }
 0x353   : > { %1115 = dma.done.wait (!%p970_p9), %s768_s30, 128  }
 0x354   : > { %1117 = vsyncadd (!%p970_p9), %s768_s30, 4294967168  ;;  %s777_s16 = scalar_lea.sflag [#allocation6], %s767_s0 }
 0x355   : > { %1119 = dma.done.wait (!%p970_p9), %s777_s16, 16  }
 0x356   : > { %1121 = vsyncadd (!%p970_p9), %s777_s16, 4294967280  ;;  %s27_s18 = sadd.s32 1, %s1144_s18   ;;  %s1436_s13 = smov %s1128_s14 }
 0x357   : > { %p24_p10 = scmp.ge.s32.totalorder %s27_s18, 4   ;;  %s1437_s14 = smov %s1132_s15 }
 0x358   : > { %s1438_s15 = smov %s1259_s26  ;;  %s1439_s16 = smov %s1140_s17 }
 0x359   : > { %s1440_s17 = smov %s1442_s21  ;;  %26 = sbr.rel (!%p24_p10) target bundleno = 10 (0xa), region = 118 }
 0x360   :  { %781 = vsyncpa [#allocation4], 1 }
 0x361   :  { %783 = vsyncpa [#allocation4 + $0x1], 1 }
 0x362   :  { %784 = vsyncpa [#allocation6], 1 }
 0x363   :  { %786 = vsyncpa [#allocation6 + $0x1], 1 }

// kernel: bert_with_classify_pallas.3
= control target key start
LH: loop header
LB: loop body
LE: loop exit
PB: predicated region body
PF: predicated region fallthrough
CT: control target
= control target key end

     0   :  { %s1004_s0 = inlined_call_operand.vmem [shape: s32[2,8], index: 0, kind: input, shape index: {}]   ;;  %s1005_s1 = inlined_call_operand.vmem [shape: f32[64,32], index: 1, kind: input, shape index: {}]   ;;  %s1006_s2 = inlined_call_operand.vmem [shape: f32[16,32], index: 2, kind: input, shape index: {}]   ;;  %s1007_s3 = inlined_call_operand.vmem [shape: f32[2,32], index: 3, kind: input, shape index: {}]   ;;  %s1008_s4 = inlined_call_operand.vmem [shape: f32[1,32], index: 4, kind: input, shape index: {}]   ;;  %s1009_s5 = inlined_call_operand.vmem [shape: f32[1,32], index: 5, kind: input, shape index: {}]   ;;  %s1010_s6 = inlined_call_operand.vmem [shape: f32[2,8,32], index: 6, kind: output, shape index: {}]  }
   0x1   :  { %s11_s23 = sshll.u32 %s1004_s0, 4  ;;  %s12_s23 = int_to_ptr.vmem [resolvable:$true] %s11_s23 }
   0x2   :  { %s861_s24 = scalar_lea.vmem %s12_s23, 32  ;;  %p866_p1 = scmp.lt.s32.totalorder %s12_s23, %s12_s23 }
   0x3   :  { %p862_p0 = scmp.ne.s32.totalorder %s12_s23, %s861_s24  ;;  %p867_p2 = scmp.lt.s32.totalorder %s861_s24, %s861_s24 }
   0x5   :  { %p868_p3 = por %p867_p2, %p866_p1 }
   0x7   :  { %p869_p4 = pnand %p868_p3, %p862_p0 }
   0x9   :  { %872 = shalt.err (!%p869_p4)  }
   0xa   :  { %s899_s25 = smov [#allocation5]  }
   0xb   :  { %14 = dma.vmem_to_smem %s12_s23, 32, %s899_s25, [#allocation4] }
   0xc   :  { %877 = dma.done.wait [#allocation4], 32 }
   0xd   :  { %878 = vsyncadd [#allocation4], 4294967264 }
   0xe   :  { %16 = sfence }
   0xf   :  { %s938_s26 = smov 0  }
  0x10 LB: > { %s831_s0 = sadd.s32 4294967295, %s897_s26   ;;  %p834_p5 = scmp.ge.s32.totalorder %s897_s26, 1  ;;  %s897_s26 = sphi %s938_s26, %s22_s26  }
  0x11   : > { %p160_p6 = scmp.lt.s32.totalorder %s897_s26, 3 }
  0x13   : > { %p161_p7 = pnand %p834_p5, %p160_p6 }
  0x14   : > { %p180_p8 = scmp.lt.s32.totalorder (!%p161_p7), %s831_s0, 1  ;;  %s946_s27 = sshll.u32 (!%p161_p7), %s831_s0, 7 }
  0x15   : > { %164 = sbr.rel (%p161_p7) target bundleno = 437 (0x1b5), region = 36  ;;  %s185_s28 = sld [smem:[#allocation5 + %s946_s27]] (!%p161_p7) }
  0x1b   : > { %s186_s11 = scalar_lea.vmem (!%p161_p7), %s1005_s1, %s185_s28 }
  0x1c   : > { %s1012_s0 = smov (!%p180_p8, %s831_s0), 1  ;;  %v204_v0 = vld [vmem:[%s186_s11] sm:$0x1] }
  0x1d   : > { %s835_s29 = sshll.u32 %s1012_s0, 3  ;;  %205 = vst [vmem:[#allocation2] sm:$0x1] %v204_v0 }
  0x1e   : > { %s952_s8 = scalar_lea.vmem %s1010_s6, %s835_s29 }
  0x1f   : > { %230 = vsyncadd [#allocation3], 16  ;;  %s231_s12 = sadd.s32 1, %s946_s27 }
  0x20   : > { %s232_s13 = sld [smem:[#allocation5 + %s231_s12]] }
  0x26   : > { %s233_s16 = scalar_lea.vmem %s1005_s1, %s232_s13 }
  0x27   : > { %v253_v1 = vld [vmem:[%s233_s16] sm:$0x1] }
  0x28   : > { %254 = vst [vmem:[#allocation2 + $0x1] sm:$0x1] %v253_v1 }
  0x29   : > { %279 = vsyncadd [#allocation3 + $0x1], 16  ;;  %s280_s17 = sadd.s32 2, %s946_s27 }
  0x2a   : > { %s281_s18 = sld [smem:[#allocation5 + %s280_s17]] }
  0x30   : > { %s282_s21 = scalar_lea.vmem %s1005_s1, %s281_s18 }
  0x31   : > { %v302_v2 = vld [vmem:[%s282_s21] sm:$0x1] }
  0x32   : > { %303 = vst [vmem:[#allocation2 + $0x2] sm:$0x1] %v302_v2 }
  0x33   : > { %328 = vsyncadd [#allocation3 + $0x2], 16  ;;  %s329_s22 = sadd.s32 3, %s946_s27 }
  0x34   : > { %s330_s23 = sld [smem:[#allocation5 + %s329_s22]] }
  0x3a   : > { %s331_s0 = scalar_lea.vmem %s1005_s1, %s330_s23 }
  0x3b   : > { %v351_v3 = vld [vmem:[%s331_s0] sm:$0x1] }
  0x3c   : > { %352 = vst [vmem:[#allocation2 + $0x3] sm:$0x1] %v351_v3 }
  0x3d   : > { %377 = vsyncadd [#allocation3 + $0x3], 16  ;;  %s378_s28 = sadd.s32 4, %s946_s27 }
  0x3e   : > { %s379_s29 = sld [smem:[#allocation5 + %s378_s28]] }
  0x44   : > { %s380_s9 = scalar_lea.vmem %s1005_s1, %s379_s29 }
  0x45   : > { %v400_v4 = vld [vmem:[%s380_s9] sm:$0x1] }
  0x46   : > { %401 = vst [vmem:[#allocation2 + $0x4] sm:$0x1] %v400_v4 }
  0x47   : > { %426 = vsyncadd [#allocation3 + $0x4], 16  ;;  %s427_s10 = sadd.s32 5, %s946_s27 }
  0x48   : > { %s428_s11 = sld [smem:[#allocation5 + %s427_s10]] }
  0x4e   : > { %s429_s14 = scalar_lea.vmem %s1005_s1, %s428_s11 }
  0x4f   : > { %v449_v5 = vld [vmem:[%s429_s14] sm:$0x1] }
  0x50   : > { %450 = vst [vmem:[#allocation2 + $0x5] sm:$0x1] %v449_v5 }
  0x51   : > { %475 = vsyncadd [#allocation3 + $0x5], 16  ;;  %s476_s15 = sadd.s32 6, %s946_s27 }
  0x52   : > { %s477_s16 = sld [smem:[#allocation5 + %s476_s15]] }
  0x58   : > { %s478_s19 = scalar_lea.vmem %s1005_s1, %s477_s16 }
  0x59   : > { %v498_v6 = vld [vmem:[%s478_s19] sm:$0x1] }
  0x5a   : > { %499 = vst [vmem:[#allocation2 + $0x6] sm:$0x1] %v498_v6 }
  0x5b   : > { %524 = vsyncadd [#allocation3 + $0x6], 16  ;;  %s525_s20 = sadd.s32 7, %s946_s27 }
  0x5c   : > { %s526_s21 = sld [smem:[#allocation5 + %s525_s20]] }
  0x62   : > { %s527_s24 = scalar_lea.vmem %s1005_s1, %s526_s21 }
  0x63   : > { %v547_v7 = vld [vmem:[%s527_s24] sm:$0x1] }
  0x64   : > { %548 = vst [vmem:[#allocation2 + $0x7] sm:$0x1] %v547_v7 }
  0x65   : > { %573 = vsyncadd [#allocation3 + $0x7], 16 }
  0x66   : > { %879 = dma.done.wait [#allocation3], 16 }
  0x67   : > { %880 = vsyncadd [#allocation3], 4294967280 }
  0x68   : > { %881 = dma.done.wait [#allocation3 + $0x1], 16 }
  0x69   : > { %882 = vsyncadd [#allocation3 + $0x1], 4294967280 }
  0x6a   : > { %883 = dma.done.wait [#allocation3 + $0x2], 16 }
  0x6b   : > { %884 = vsyncadd [#allocation3 + $0x2], 4294967280 }
  0x6c   : > { %885 = dma.done.wait [#allocation3 + $0x3], 16 }
  0x6d   : > { %886 = vsyncadd [#allocation3 + $0x3], 4294967280 }
  0x6e   : > { %887 = dma.done.wait [#allocation3 + $0x4], 16 }
  0x6f   : > { %888 = vsyncadd [#allocation3 + $0x4], 4294967280 }
  0x70   : > { %889 = dma.done.wait [#allocation3 + $0x5], 16 }
  0x71   : > { %890 = vsyncadd [#allocation3 + $0x5], 4294967280 }
  0x72   : > { %891 = dma.done.wait [#allocation3 + $0x6], 16 }
  0x73   : > { %892 = vsyncadd [#allocation3 + $0x6], 4294967280 }
  0x74   : > { %893 = dma.done.wait [#allocation3 + $0x7], 16 }
  0x75   : > { %894 = vsyncadd [#allocation3 + $0x7], 4294967280  ;;  %v599_v8 = vld [vmem:[#allocation2] sm:$0xff]  ;;  %vm610_vm0 = vcmask 261120  }
  0x76   : > { %v600_v9 = vld [vmem:[%s1006_s2] sm:$0xff] }
  0x77   : > { %v837_v10 = vld [vmem:[%s1007_s3] ss:$0 sm:$0xff]  ;;  %v601_v11 = vadd.f32 %v600_v9, %v599_v8 }
  0x78   : > { %v838_v23 = vld [vmem:[%s1008_s4] ss:$0 sm:$0xff] }
  0x79   : > { %v607_v12 = vadd.f32 %v837_v10, %v601_v11  ;;  %v839_v25 = vld [vmem:[%s1009_s5] ss:$0 sm:$0xff] }
  0x7b   : > { %v611_v13 = vsel %vm610_vm0, %v607_v12, 0.0 }
  0x7c   : > { %612 = vadd.xlane.f32.xlu0 %v611_v13 }
 0x109   : > { %v613_v14 = vpop.xlane.xlu0 %612 }
 0x10a   : > { %v615_v15 = vmul.f32 0.03125, %v613_v14 }
 0x10c   : > { %v616_v16 = vsub.f32 %v607_v12, %v615_v15 }
 0x10e   : > { %v617_v17 = vmul.f32 %v616_v16, %v616_v16 }
 0x110   : > { %v618_v18 = vsel %vm610_vm0, %v617_v17, 0.0 }
 0x111   : > { %619 = vadd.xlane.f32.xlu0 %v618_v18 }
 0x19e   : > { %v620_v19 = vpop.xlane.xlu0 %619 }
 0x19f   : > { %v621_v20 = vmul.f32 0.03125, %v620_v19 }
 0x1a1   : > { %v622_v21 = vadd.f32 1e-05, %v621_v20 }
 0x1a3   : > { %859 = vrsqrt.f32 %v622_v21 }
 0x1ad   : > { %v860_v22 = vpop.eup %859 }
 0x1ae   : > { %v624_v24 = vmul.f32 %v860_v22, %v616_v16 }
 0x1b0   : > { %v631_v26 = vmul.f32 %v838_v23, %v624_v24 }
 0x1b2   : > { %v638_v27 = vadd.f32 %v839_v25, %v631_v26 }
 0x1b4   : > { %639 = vst.msk [vmem:[%s952_s8] sm:$0xff] %vm610_vm0, %v638_v27 }
 0x1b5 PF: > { %s22_s26 = sadd.s32 1, %s897_s26  }
 0x1b6   : > { %p19_p9 = scmp.ge.s32.totalorder %s22_s26, 4  }
 0x1b8   :  { %21 = sbr.rel (!%p19_p9) target bundleno = 16 (0x10), region = 412 }
 0x1bf   :  { %659 = vsyncmov [#allocation3] }
 0x1c2   :  { %s660_s10 = vpop.sfrf %659 }
 0x1c3   :  { %p842_p10 = scmp.ne.s32.totalorder %s660_s10, 0 }
 0x1c5   :  { %664 = shalt.err (%p842_p10)  }
 0x1c6   :  { %666 = vsyncmov [#allocation3 + $0x1] }
 0x1c9   :  { %s667_s11 = vpop.sfrf %666 }
 0x1ca   :  { %p843_p11 = scmp.ne.s32.totalorder %s667_s11, 0 }
 0x1cc   :  { %671 = shalt.err (%p843_p11)  }
 0x1cd   :  { %673 = vsyncmov [#allocation3 + $0x2] }
 0x1d0   :  { %s674_s12 = vpop.sfrf %673 }
 0x1d1   :  { %p844_p12 = scmp.ne.s32.totalorder %s674_s12, 0 }
 0x1d3   :  { %678 = shalt.err (%p844_p12)  }
 0x1d4   :  { %680 = vsyncmov [#allocation3 + $0x3] }
 0x1d7   :  { %s681_s8 = vpop.sfrf %680 }
 0x1d8   :  { %p845_p13 = scmp.ne.s32.totalorder %s681_s8, 0 }
 0x1da   :  { %685 = shalt.err (%p845_p13)  }
 0x1db   :  { %687 = vsyncmov [#allocation3 + $0x4] }
 0x1de   :  { %s688_s13 = vpop.sfrf %687 }
 0x1df   :  { %p846_p0 = scmp.ne.s32.totalorder %s688_s13, 0 }
 0x1e1   :  { %692 = shalt.err (%p846_p0)  }
 0x1e2   :  { %694 = vsyncmov [#allocation3 + $0x5] }
 0x1e5   :  { %s695_s1 = vpop.sfrf %694 }
 0x1e6   :  { %p847_p1 = scmp.ne.s32.totalorder %s695_s1, 0 }
 0x1e8   :  { %699 = shalt.err (%p847_p1)  }
 0x1e9   :  { %701 = vsyncmov [#allocation3 + $0x6] }
 0x1ec   :  { %s702_s2 = vpop.sfrf %701 }
 0x1ed   :  { %p848_p2 = scmp.ne.s32.totalorder %s702_s2, 0 }
 0x1ef   :  { %706 = shalt.err (%p848_p2)  }
 0x1f0   :  { %708 = vsyncmov [#allocation3 + $0x7] }
 0x1f3   :  { %s709_s3 = vpop.sfrf %708 }
 0x1f4   :  { %p849_p3 = scmp.ne.s32.totalorder %s709_s3, 0 }
 0x1f6   :  { %713 = shalt.err (%p849_p3)  }

// kernel: bert_with_classify_pallas.4
= control target key start
LH: loop header
LB: loop body
LE: loop exit
PB: predicated region body
PF: predicated region fallthrough
CT: control target
= control target key end

     0   :  { %s2369_s25 = smov 0   ;;  %s2371_s26 = smov 0   ;;  %s2629_s0 = inlined_call_operand.vmem [shape: f32[2,8,32], index: 0, kind: input, shape index: {}]   ;;  %s2630_s1 = inlined_call_operand.vmem [shape: f32[2,32,96], index: 1, kind: input, shape index: {}]   ;;  %s2631_s2 = inlined_call_operand.vmem [shape: f32[2,1,96], index: 2, kind: input, shape index: {}]   ;;  %s2632_s3 = inlined_call_operand.vmem [shape: f32[2,32,32], index: 3, kind: input, shape index: {}]   ;;  %s2633_s4 = inlined_call_operand.vmem [shape: f32[2,1,32], index: 4, kind: input, shape index: {}]   ;;  %s2634_s5 = inlined_call_operand.vmem [shape: f32[2,1,32], index: 5, kind: input, shape index: {}]   ;;  %s2635_s6 = inlined_call_operand.vmem [shape: f32[2,1,32], index: 6, kind: input, shape index: {}]   ;;  %s2636_s7 = inlined_call_operand.vmem [shape: f32[2,32,64], index: 7, kind: input, shape index: {}]   ;;  %s2637_s8 = inlined_call_operand.vmem [shape: f32[2,1,64], index: 8, kind: input, shape index: {}]   ;;  %s2638_s9 = inlined_call_operand.vmem [shape: f32[2,64,32], index: 9, kind: input, shape index: {}]   ;;  %s2639_s10 = inlined_call_operand.vmem [shape: f32[2,1,32], index: 10, kind: input, shape index: {}]   ;;  %s2640_s11 = inlined_call_operand.vmem [shape: f32[2,1,32], index: 11, kind: input, shape index: {}]   ;;  %s2641_s12 = inlined_call_operand.vmem [shape: f32[2,1,32], index: 12, kind: input, shape index: {}]   ;;  %s2642_s13 = inlined_call_operand.vmem [shape: f32[2,8,32], index: 13, kind: output, shape index: {}]  }
   0x1   :  { %2647 = sst [smem:[#allocation10_spill]] %s2629_s0  ;;  %s2373_s27 = smov 0  }
   0x2   :  { %2648 = sst [smem:[#allocation11_spill]] %s2630_s1  ;;  %s2375_s28 = smov 0  }
   0x3   :  { %2649 = sst [smem:[#allocation12_spill]] %s2632_s3  ;;  %s2377_s29 = smov 0  }
   0x4   :  { %2650 = sst [smem:[#allocation13_spill]] %s2636_s7 }
   0x5   :  { %2651 = sst [smem:[#allocation14_spill]] %s2637_s8 }
   0x6   :  { %2652 = sst [smem:[#allocation15_spill]] %s2641_s12 }
   0x7   :  { %2653 = sst [smem:[#allocation16_spill]] %s2642_s13 }
   0x8 LB: > { %2654 = sst [smem:[#allocation4_spill]] %s2264_s25  ;;  %s32_s30 = sadd.s32 1, %s2272_s27  ;;  %s2280_s29 = sphi %s2377_s29, %s23_s29   ;;  %s2276_s28 = sphi %s2375_s28, %s2680_s28   ;;  %s2272_s27 = sphi %s2373_s27, %s2679_s27   ;;  %s2268_s26 = sphi %s2371_s26, %s2678_s26   ;;  %s2264_s25 = sphi %s2369_s25, %s2677_s25  }
   0x9   : > { %2655 = sst [smem:[#allocation5_spill]] %s2272_s27  ;;  %s35_s14 = sadd.s32 1, %s2276_s28 }
   0xa   : > { %2656 = sst [smem:[#allocation6_spill]] %s2276_s28  ;;  %p33_p0 = scmp.ge.s32.totalorder %s32_s30, 2 }
   0xb   : > { %2657 = sst [smem:[#allocation7_spill]] %s2280_s29  ;;  %p1956_p1 = scmp.ge.s32.totalorder %s2280_s29, 1 }
   0xc   : > { %p502_p2 = scmp.lt.s32.totalorder %s2280_s29, 5  ;;  %s2682_s30 = smov (%p33_p0, %s32_s30), 0 }
   0xd   : > { %2658 = sst [smem:[#allocation8_spill]] %s2682_s30  ;;  %s2684_s14 = smov (!%p33_p0, %s35_s14), %s2276_s28 }
   0xe   : > { %p503_p3 = pnand %p1956_p1, %p502_p2  ;;  %p37_p4 = scmp.ge.s32.totalorder %s2684_s14, 2 }
   0xf   : > { %p588_p5 = scmp.lt.s32.totalorder (!%p503_p3), %s2268_s26, 1  ;;  %p592_p6 = scmp.lt.s32.totalorder (!%p503_p3), %s2264_s25, 1 }
  0x10   : > { %s2686_s14 = smov (%p37_p4, %s2684_s14), 0  ;;  %506 = sbr.rel (%p503_p3) target bundleno = 2465 (0x9a1), region = 72 }
  0x11   : > { %2659 = sst [smem:[#allocation9_spill]] %s2686_s14  ;;  %s2660_s0 = sld [smem:[#allocation10_spill]] (!%p503_p3) }
  0x12   : > { %s2661_s1 = sld [smem:[#allocation11_spill]] (!%p503_p3)  ;;  %s2662_s3 = sld [smem:[#allocation12_spill]] (!%p503_p3) }
  0x13   : > { %s2663_s7 = sld [smem:[#allocation13_spill]] (!%p503_p3)  ;;  %s2665_s22 = sld [smem:[#allocation15_spill]] (!%p503_p3) }
  0x14   : > { %s2666_s30 = sld [smem:[#allocation16_spill]] (!%p503_p3) }
  0x17   : > { %s2688_s26 = smov (!%p588_p5, %s2268_s26), 1 }
  0x18   : > { %s2403_s15 = scalar_select %p592_p6, %s2264_s25, 1 }
  0x19   : > { %s1957_s16 = sshll.u32 %s2688_s26, 3  ;;  %s2667_s25 = sld [smem:[#allocation4_spill]] }
  0x1a   : > { %s591_s19 = scalar_lea.vmem %s2660_s0, %s1957_s16  ;;  %s1995_s20 = sshll.u32 %s2403_s15, 5 }
  0x1b   : > { %s596_s23 = scalar_lea.vmem %s2661_s1, %s1995_s20  ;;  %s2419_s29 = scalar_lea.vmem %s2662_s3, %s1995_s20 }
  0x1c   : > { %s2436_s24 = scalar_lea.vmem %s2663_s7, %s1995_s20  ;;  %s1998_s3 = sshll.u32 %s2403_s15, 6 }
  0x1d   : > { %s629_s13 = scalar_lea.vmem %s2639_s10, %s2403_s15  ;;  %s2450_s0 = scalar_lea.vmem %s2638_s9, %s1998_s3 }
  0x1e   : > { %s632_s1 = scalar_lea.vmem %s2640_s11, %s2403_s15  ;;  %s635_s7 = scalar_lea.vmem %s2665_s22, %s2403_s15 }
  0x1f   : > { %s2463_s8 = scalar_lea.vmem %s2666_s30, %s1957_s16  ;;  %p1967_p7 = scmp.ne.s32.totalorder %s2667_s25, 0 }
  0x20   : > { %v644_v0 = vld [vmem:[%s591_s19] sm:$0xff] (!%p1967_p7)  ;;  %vm645_vm0 = vcmask (!%p1967_p7), 261120  }
  0x21   : > { %643 = sbr.rel (%p1967_p7) target bundleno = 40 (0x28), region = 76  ;;  %646 = vst.msk [vmem:[#allocation2] sm:$0xff] (!%p1967_p7), %vm645_vm0, %v644_v0 }
  0x28 PF: > { %v648_v1 = vld [vmem:[%s596_s23] sm:$0xff]  ;;  %v649_v2 = vld [vmem:[%s596_s23 + $0x8] sm:$0xff]  ;;  %v650_v3 = vld [vmem:[%s596_s23 + $0x10] sm:$0xff]  ;;  %v2282_v4 = vmov 0.0|0.0   ;;  %vm2283_vm1 = vmmov 0   ;;  %v2284_v7 = vmov 0.0   ;;  %s2668_s16 = scalar_lea.vmem %s2631_s2, %s2403_s15 }
  0x29   : > { %2131 = vmatprep.subr.bf16.mxu1 %v2282_v4  ;;  %v2132_v5 = vpack.c.bf16 %v649_v2, %v648_v1  ;;  %v651_v6 = vld [vmem:[%s596_s23 + $0x18] sm:$0xff]  ;;  %2047 = vmatprep.mubr.msk.f32.mxu1 %vm2283_vm1, %v2284_v7  ;;  %v2473_v9 = vld [vmem:[#allocation2] sm:$0xff]  ;;  %vm659_vm2 = vcmask 261120   ;;  %s2285_s19 = smov 120   ;;  %s2286_s23 = smov 96   ;;  %vm736_vm3 = vcmask 64512  }
  0x2a   : > { %2060 = vmatprep.subr.mxu0 %v2284_v7  ;;  %2062 = vmatprep.mubr.msk.f32.mxu0 %vm2283_vm1, %v2284_v7  ;;  %v2135_v8 = vpack.c.bf16 %v651_v6, %v650_v3  ;;  %v1968_v10 = vld [vmem:[%s2668_s16] ss:$0 sm:$0xff]  ;;  %s2287_s22 = smov 80   ;;  %s2288_s26 = smov 88   ;;  %vm1070_vm4 = vcmask 130112   ;;  %vm1242_vm5 = vcmask 195712  }
  0x2b   : > { %2133 = vmatpush3.bf16.msra.mxu1 %v2132_v5  ;;  %s2289_s17 = smov 72   ;;  %s2290_s18 = smov 112   ;;  %vm1414_vm6 = vcmask 261312   ;;  %vm1658_vm8 = vcmask 523264  }
  0x2c   : > { %2134 = vmatprep.subr.bf16.mxu1 %v2282_v4  ;;  %s2291_s12 = smov 104   ;;  %s2292_s21 = smov 56  }
  0x2d   : > { %s2293_s20 = smov 64   ;;  %s2294_s14 = smov 40  }
  0x2e   : > { %s2295_s27 = smov 48   ;;  %s2296_s28 = smov 8  }
  0x2f   : > { %2136 = vmatpush3.bf16.msra.mxu1 %v2135_v8  ;;  %s2297_s25 = smov 16   ;;  %s2298_s3 = smov 24  }
  0x30   : > { %2050 = vmatprep.subr.mxu1 %v2284_v7  ;;  %s2669_s16 = scalar_lea.vmem %s2633_s4, %s2403_s15 }
  0x32   : > { %2048 = vmatmul.mubr.msk.f32.vlgmr.msra.gmra.mrb[0].mxu1 %vm659_vm2, %v2473_v9 }
  0x33   : > { %2052 = vmatprep.mubr.msk.f32.mxu1 %vm2283_vm1, %v2284_v7 }
 0x105   : > { %v729_v11 = vpop.f32.mrb[0].mxu1 }
 0x106   : > { %v2485_v12 = vadd.f32 %v1968_v10, %v729_v11  ;;  %v2049_v13 = vpop.f32.mrb[1].mxu1 }
 0x107   : > { %v1418_v13 = vld [vmem:[%s2419_s29 + $0x8] sm:$0xff] }
 0x108   : > { %900 = vrot.lane.b32.xlu1 %v2485_v12, %s2285_s19  ;;  %734 = vrot.lane.b32.xlu0 %v2485_v12, %s2286_s23 }
 0x10c   : > { %1074 = vrot.lane.b32.xlu1 %v2485_v12, %s2287_s22  ;;  %902 = vrot.lane.b32.xlu0 %v2485_v12, %s2288_s26  ;;  %s2670_s22 = scalar_lea.vmem %s2634_s5, %s2403_s15 }
 0x110   : > { %1246 = vrot.lane.b32.xlu1 %v2485_v12, %s2289_s17  ;;  %1072 = vrot.lane.b32.xlu0 %v2485_v12, %s2290_s18 }
 0x114   : > { %1244 = vrot.lane.b32.xlu0 %v2485_v12, %s2291_s12 }
 0x17a   : > { %v901_v14 = vpop.permute.xlu1 %900  ;;  %v735_v15 = vpop.permute.xlu0 %734 }
 0x17b   : > { %2051 = vmatpush3.xpose.msk.msra.mxu1 %vm736_vm3, %v735_v15 }
 0x17c   : > { %2055 = vmatprep.subr.mxu1 %v2284_v7 }
 0x17e   : > { %2053 = vmatmul.mubr.msk.f32.vlgmr.msra.gmra.mrb[2].mxu1 %vm736_vm3, %v2485_v12  ;;  %v903_v16 = vpop.permute.xlu0 %902  ;;  %v1075_v17 = vpop.permute.xlu1 %1074 }
 0x17f   : > { %2061 = vmatpush3.xpose.msk.msra.mxu0 %vm736_vm3, %v903_v16  ;;  %2057 = vmatprep.mubr.msk.f32.mxu1 %vm2283_vm1, %v2284_v7 }
 0x180   : > { %2070 = vmatprep.subr.mxu0 %v2284_v7 }
 0x182   : > { %2063 = vmatmul.mubr.msk.f32.vlgmr.msra.gmra.mrb[0].mxu0 %vm736_vm3, %v901_v14  ;;  %v1073_v18 = vpop.permute.xlu0 %1072  ;;  %v1247_v19 = vpop.permute.xlu1 %1246 }
 0x183   : > { %2071 = vmatpush3.xpose.msk.msra.mxu0 %vm736_vm3, %v1075_v17  ;;  %2072 = vmatprep.mubr.msk.f32.mxu0 %vm2283_vm1, %v2284_v7  ;;  %v1419_v17 = vld [vmem:[%s2419_s29 + $0x10] sm:$0xff] }
 0x184   : > { %2080 = vmatprep.subr.mxu0 %v2284_v7 }
 0x186   : > { %2073 = vmatmul.mubr.msk.f32.vlgmr.msra.gmra.mrb[2].mxu0 %vm736_vm3, %v1073_v18  ;;  %v1245_v20 = vpop.permute.xlu0 %1244  ;;  %v1420_v18 = vld [vmem:[%s2419_s29 + $0x18] sm:$0xff] }
 0x187   : > { %2081 = vmatpush3.xpose.msk.msra.mxu0 %vm736_vm3, %v1247_v19  ;;  %2082 = vmatprep.mubr.msk.f32.mxu0 %vm2283_vm1, %v2284_v7 }
 0x188   : > { %2137 = vmatprep.subr.bf16.mxu0 %v2282_v4 }
 0x18a   : > { %2083 = vmatmul.mubr.msk.f32.vlgmr.msra.gmra.mrb[4].mxu0 %vm736_vm3, %v1245_v20 }
 0x18b   : > { %2098 = vmatprep.mubr.msk.f32.mxu0 %vm2283_vm1, %v2284_v7 }
 0x251   : > { %v807_v21 = vpop.f32.mrb[2].mxu1 }
 0x252   : > { %v811_v22 = vmul.f32 0.35355338, %v807_v21  ;;  %v2054_v23 = vpop.f32.mrb[3].mxu1  ;;  %v2141_v21 = vpack.c.bf16 %v1420_v18, %v1419_v17 }
 0x254   : > { %v812_v24 = vsel %vm736_vm3, %v811_v22, -inf }
 0x255   : > { %v974_v25 = vpop.f32.mrb[0].mxu0  ;;  %813 = vmax.xlane.f32.xlu1 %v812_v24 }
 0x256   : > { %v978_v26 = vmul.f32 0.35355338, %v974_v25  ;;  %v2064_v27 = vpop.f32.mrb[1].mxu0 }
 0x258   : > { %v979_v28 = vsel %vm736_vm3, %v978_v26, -inf }
 0x259   : > { %980 = vmax.xlane.f32.xlu0 %v979_v28  ;;  %v1146_v29 = vpop.f32.mrb[2].mxu0 }
 0x25a   : > { %v1150_v30 = vmul.f32 0.35355338, %v1146_v29  ;;  %v2074_v31 = vpop.f32.mrb[3].mxu0 }
 0x25c   : > { %v1151_v32 = vsel %vm736_vm3, %v1150_v30, -inf }
 0x25d   : > { %1152 = vmax.xlane.f32.xlu0 %v1151_v32  ;;  %v1318_v33 = vpop.f32.mrb[4].mxu0 }
 0x25e   : > { %v2084_v34 = vpop.f32.mrb[5].mxu0  ;;  %v1322_v35 = vmul.f32 0.35355338, %v1318_v33 }
 0x260   : > { %v1323_v36 = vsel %vm736_vm3, %v1322_v35, -inf }
 0x266   : > { %988 = vrot.lane.b32.xlu1 %v2485_v12, %s2292_s21  ;;  %s2672_s21 = sld [smem:[#allocation14_spill]] }
 0x273   : > { %821 = vrot.lane.b32.xlu0 %v2485_v12, %s2293_s20  ;;  %s2673_s20 = scalar_lea.vmem %s2672_s21, %s2403_s15 }
 0x277   : > { %1332 = vrot.lane.b32.xlu0 %v2485_v12, %s2294_s14 }
 0x28a   : > { %1324 = vmax.xlane.f32.xlu1 %v1323_v36 }
 0x29b   : > { %1160 = vrot.lane.b32.xlu1 %v2485_v12, %s2295_s27  ;;  %v1417_v12 = vld [vmem:[%s2419_s29] sm:$0xff]  ;;  %s2675_s29 = sld [smem:[#allocation4_spill]] }
 0x29c   : > { %v2138_v16 = vpack.c.bf16 %v1418_v13, %v1417_v12 }
 0x29e   : > { %2139 = vmatpush3.bf16.msra.mxu0 %v2138_v16 }
 0x29f   : > { %2140 = vmatprep.subr.bf16.mxu0 %v2282_v4 }
 0x2a1   : > { %p1992_p8 = scmp.ne.s32.totalorder %s2675_s29, 1 }
 0x2a2   : > { %2142 = vmatpush3.bf16.msra.mxu0 %v2141_v21 }
 0x2a3   : > { %2149 = vmatprep.subr.bf16.mxu0 %v2282_v4 }
 0x2e2   : > { %v814_v37 = vpop.xlane.xlu1 %813 }
 0x2e3   : > { %v815_v38 = vsub.f32 %v811_v22, %v814_v37 }
 0x2e5   : > { %v816_v39 = vmul.f32 1.442695, %v815_v38 }
 0x2e6   : > { %v981_v40 = vpop.xlane.xlu0 %980  ;;  %v989_v48 = vpop.permute.xlu1 %988 }
 0x2e7   : > { %2218 = vpow2.f32 %v816_v39  ;;  %v982_v41 = vsub.f32 %v978_v26, %v981_v40  ;;  %v1532_v40 = vld [vmem:[%s2436_s24] sm:$0xff] }
 0x2e9   : > { %v983_v42 = vmul.f32 1.442695, %v982_v41  ;;  %v1533_v41 = vld [vmem:[%s2436_s24 + $0x8] sm:$0xff] }
 0x2ea   : > { %v1153_v43 = vpop.xlane.xlu0 %1152 }
 0x2eb   : > { %2220 = vpow2.f32 %v983_v42  ;;  %v1154_v44 = vsub.f32 %v1150_v30, %v1153_v43  ;;  %v1982_v30 = vld [vmem:[%s2669_s16] ss:$0 sm:$0xff]  ;;  %v2144_v42 = vpack.c.bf16 %v1533_v41, %v1532_v40  ;;  %v1535_v43 = vld [vmem:[%s2436_s24 + $0x18] sm:$0xff] }
 0x2ed   : > { %v1155_v45 = vmul.f32 1.442695, %v1154_v44 }
 0x2ee   : > { %v822_v46 = vpop.permute.xlu0 %821 }
 0x2ef   : > { %2222 = vpow2.f32 %v1155_v45  ;;  %2056 = vmatpush3.msra.mxu1 %v822_v46 }
 0x2f0   : > { %2065 = vmatprep.subr.mxu1 %v2284_v7 }
 0x2f1   : > { %v2219_v47 = vpop.eup %2218 }
 0x2f2   : > { %2058 = vmatmul.mubr.msk.f32.vlgmr.msra.gmra.mrb[4].mxu1 %vm736_vm3, %v2219_v47  ;;  %v818_v53 = vsel %vm736_vm3, %v2219_v47, 0.0  ;;  %v1333_v58 = vpop.permute.xlu0 %1332 }
 0x2f3   : > { %2066 = vmatpush3.msra.mxu1 %v989_v48  ;;  %2067 = vmatprep.mubr.msk.f32.mxu1 %vm2283_vm1, %v2284_v7 }
 0x2f4   : > { %2075 = vmatprep.subr.mxu1 %v2284_v7 }
 0x2f5   : > { %v2221_v49 = vpop.eup %2220 }
 0x2f6   : > { %2068 = vmatmul.mubr.msk.f32.vlgmr.msra.gmra.mrb[6].mxu1 %vm736_vm3, %v2221_v49  ;;  %v985_v50 = vsel %vm736_vm3, %v2221_v49, 0.0  ;;  %v1984_v49 = vld [vmem:[%s2670_s22] ss:$0 sm:$0xff] }
 0x2f7   : > { %986 = vadd.xlane.f32.xlu1 %v985_v50  ;;  %2077 = vmatprep.mubr.msk.f32.mxu1 %vm2283_vm1, %v2284_v7 }
 0x2f9   : > { %v2223_v51 = vpop.eup %2222 }
 0x2fa   : > { %v1157_v52 = vsel %vm736_vm3, %v2223_v51, 0.0 }
 0x2fb   : > { %1158 = vadd.xlane.f32.xlu0 %v1157_v52  ;;  %819 = vadd.xlane.f32.xlu1 %v818_v53 }
 0x317   : > { %v1325_v54 = vpop.xlane.xlu1 %1324 }
 0x318   : > { %v1326_v55 = vsub.f32 %v1322_v35, %v1325_v54  ;;  %v1643_v54 = vld [vmem:[%s2450_s0] sm:$0xff] }
 0x31a   : > { %v1327_v56 = vmul.f32 1.442695, %v1326_v55  ;;  %v1644_v55 = vld [vmem:[%s2450_s0 + $0x8] sm:$0xff] }
 0x31b   : > { %v1161_v57 = vpop.permute.xlu1 %1160 }
 0x31c   : > { %2224 = vpow2.f32 %v1327_v56  ;;  %2076 = vmatpush3.msra.mxu1 %v1161_v57  ;;  %v2150_v56 = vpack.c.bf16 %v1644_v55, %v1643_v54  ;;  %v1645_v57 = vld [vmem:[%s2450_s0 + $0x10] sm:$0xff] }
 0x31d   : > { %2078 = vmatmul.mubr.msk.f32.vlgmr.msra.gmra.mrb[8].mxu1 %vm736_vm3, %v2223_v51  ;;  %2085 = vmatprep.subr.mxu1 %v2284_v7 }
 0x31e   : > { %2086 = vmatpush3.msra.mxu1 %v1333_v58  ;;  %2087 = vmatprep.mubr.msk.f32.mxu1 %vm2283_vm1, %v2284_v7  ;;  %v1646_v58 = vld [vmem:[%s2450_s0 + $0x18] sm:$0xff] }
 0x31f   : > { %2143 = vmatprep.subr.bf16.mxu1 %v2282_v4 }
 0x326   : > { %v2225_v59 = vpop.eup %2224 }
 0x327   : > { %2088 = vmatmul.mubr.msk.f32.vlgmr.msra.gmra.mrb[10].mxu1 %vm736_vm3, %v2225_v59  ;;  %v1329_v60 = vsel %vm736_vm3, %v2225_v59, 0.0  ;;  %v2153_v59 = vpack.c.bf16 %v1646_v58, %v1645_v57 }
 0x328   : > { %1330 = vadd.xlane.f32.xlu0 %v1329_v60  ;;  %2109 = vmatprep.mubr.msk.f32.mxu1 %vm2283_vm1, %v2284_v7  ;;  %v1647_v60 = vld [vmem:[%s2450_s0 + $0x20] sm:$0xff] }
 0x329   : > { %2145 = vmatpush3.bf16.msra.mxu1 %v2144_v42 }
 0x32a   : > { %2146 = vmatprep.subr.bf16.mxu1 %v2282_v4 }
 0x384   : > { %v987_v61 = vpop.xlane.xlu1 %986 }
 0x388   : > { %v820_v62 = vpop.xlane.xlu1 %819  ;;  %v1159_v10 = vpop.xlane.xlu0 %1158 }
 0x389   : > { %2226 = vrcp.f32 %v820_v62 }
 0x38a   : > { %2228 = vrcp.f32 %v987_v61  ;;  %v1648_v61 = vld [vmem:[%s2450_s0 + $0x28] sm:$0xff] }
 0x38b   : > { %2230 = vrcp.f32 %v1159_v10  ;;  %v2156_v62 = vpack.c.bf16 %v1648_v61, %v1647_v60 }
 0x393   : > { %v2227_v63 = vpop.eup %2226 }
 0x394   : > { %v2229_v3 = vpop.eup %2228 }
 0x395   : > { %v2231_v14 = vpop.eup %2230 }
 0x3b5   : > { %v1331_v11 = vpop.xlane.xlu0 %1330 }
 0x3b6   : > { %2232 = vrcp.f32 %v1331_v11 }
 0x3c0   : > { %v2233_v22 = vpop.eup %2232 }
 0x3c5   : > { %v893_v0 = vpop.f32.mrb[4].mxu1 }
 0x3c6   : > { %v898_v1 = vmul.f32 %v2227_v63, %v893_v0  ;;  %v2059_v2 = vpop.f32.mrb[5].mxu1  ;;  %v1649_v63 = vld [vmem:[%s2450_s0 + $0x30] sm:$0xff]  ;;  %v1650_v0 = vld [vmem:[%s2450_s0 + $0x38] sm:$0xff] }
 0x3c7   : > { %v1986_v2 = vld [vmem:[%s2673_s20] ss:$0 sm:$0xff] }
 0x3c8   : > { %899 = vst.msk [vmem:[#allocation3] sm:$0xff] %vm736_vm3, %v898_v1  ;;  %v2159_v1 = vpack.c.bf16 %v1650_v0, %v1649_v63 }
 0x3c9   : > { %v1060_v5 = vpop.f32.mrb[6].mxu1 }
 0x3ca   : > { %v1065_v6 = vmul.f32 %v2229_v3, %v1060_v5  ;;  %v2069_v8 = vpop.f32.mrb[7].mxu1 }
 0x3cc   : > { %1067 = vrot.lane.b32.xlu0 %v1065_v6, %s2296_s28 }
 0x3f0   : > { %v1232_v15 = vpop.f32.mrb[8].mxu1 }
 0x3f1   : > { %v1237_v19 = vmul.f32 %v2231_v14, %v1232_v15  ;;  %v2079_v20 = vpop.f32.mrb[9].mxu1 }
 0x3f3   : > { %1239 = vrot.lane.b32.xlu1 %v1237_v19, %s2297_s25 }
 0x3fa   : > { %v1404_v23 = vpop.f32.mrb[10].mxu1 }
 0x3fb   : > { %v1409_v24 = vmul.f32 %v2233_v22, %v1404_v23  ;;  %v2089_v25 = vpop.f32.mrb[11].mxu1 }
 0x3fd   : > { %1411 = vrot.lane.b32.xlu1 %v1409_v24, %s2298_s3 }
 0x43e   : > { %v1068_v26 = vpop.permute.xlu0 %1067 }
 0x43f   : > { %1071 = vst.msk [vmem:[#allocation3] sm:$0xff] %vm1070_vm4, %v1068_v26 }
 0x465   : > { %v1240_v27 = vpop.permute.xlu1 %1239 }
 0x466   : > { %1243 = vst.msk [vmem:[#allocation3] sm:$0xff] %vm1242_vm5, %v1240_v27 }
 0x46f   : > { %v1412_v28 = vpop.permute.xlu1 %1411 }
 0x470   : > { %1415 = vst.msk [vmem:[#allocation3] sm:$0xff] %vm1414_vm6, %v1412_v28 }
 0x477   : > { %v1416_v29 = vld [vmem:[#allocation3] sm:$0xff] }
 0x478   : > { %2099 = vmatmul.mubr.msk.f32.vlgmr.msra.gmra.mrb[6].mxu0 %vm659_vm2, %v1416_v29 }
 0x479   : > { %2128 = vmatprep.mubr.msk.f32.mxu0 %vm2283_vm1, %v2284_v7  ;;  %2151 = vmatpush3.bf16.msra.mxu0 %v2150_v56 }
 0x47a   : > { %2152 = vmatprep.subr.bf16.mxu0 %v2282_v4 }
 0x47d   : > { %2154 = vmatpush3.bf16.msra.mxu0 %v2153_v59 }
 0x47e   : > { %2155 = vmatprep.subr.bf16.mxu0 %v2282_v4 }
 0x481   : > { %2157 = vmatpush3.bf16.msra.mxu0 %v2156_v62 }
 0x482   : > { %2158 = vmatprep.subr.bf16.mxu0 %v2282_v4 }
 0x485   : > { %2160 = vmatpush3.bf16.msra.mxu0 %v2159_v1 }
 0x54b   : > { %v1497_v31 = vpop.f32.mrb[6].mxu0 }
 0x54c   : > { %v1498_v32 = vadd.f32 %v1982_v30, %v1497_v31  ;;  %v2100_v33 = vpop.f32.mrb[7].mxu0 }
 0x54d   : > { %v1988_v33 = vld [vmem:[%s629_s13] ss:$0 sm:$0xff] }
 0x54e   : > { %v1501_v34 = vadd.f32 %v1498_v32, %v2473_v9  ;;  %v1534_v9 = vld [vmem:[%s2436_s24 + $0x10] sm:$0xff]  ;;  %s2671_s24 = scalar_lea.vmem %s2635_s6, %s2403_s15 }
 0x54f   : > { %v2147_v44 = vpack.c.bf16 %v1535_v43, %v1534_v9  ;;  %v1985_v51 = vld [vmem:[%s2671_s24] ss:$0 sm:$0xff] }
 0x550   : > { %v1504_v35 = vsel %vm659_vm2, %v1501_v34, 0.0 }
 0x551   : > { %1505 = vadd.xlane.f32.xlu0 %v1504_v35  ;;  %2148 = vmatpush3.bf16.msra.mxu1 %v2147_v44 }
 0x5de   : > { %v1506_v36 = vpop.xlane.xlu0 %1505 }
 0x5df   : > { %v1508_v37 = vmul.f32 0.03125, %v1506_v36 }
 0x5e1   : > { %v1509_v38 = vsub.f32 %v1501_v34, %v1508_v37 }
 0x5e3   : > { %v1510_v39 = vmul.f32 %v1509_v38, %v1509_v38 }
 0x5e5   : > { %v1511_v7 = vsel %vm659_vm2, %v1510_v39, 0.0 }
 0x5e6   : > { %1512 = vadd.xlane.f32.xlu1 %v1511_v7 }
 0x673   : > { %v1513_v45 = vpop.xlane.xlu1 %1512 }
 0x674   : > { %v1514_v46 = vmul.f32 0.03125, %v1513_v45 }
 0x676   : > { %v1515_v47 = vadd.f32 1e-05, %v1514_v46  ;;  %v1990_v46 = vld [vmem:[%s632_s1] ss:$0 sm:$0xff] }
 0x678   : > { %2234 = vrsqrt.f32 %v1515_v47 }
 0x682   : > { %v2235_v48 = vpop.eup %2234 }
 0x683   : > { %v1517_v50 = vmul.f32 %v2235_v48, %v1509_v38  ;;  %v1991_v48 = vld [vmem:[%s635_s7] ss:$0 sm:$0xff] }
 0x685   : > { %v1524_v52 = vmul.f32 %v1984_v49, %v1517_v50 }
 0x687   : > { %v1531_v53 = vadd.f32 %v1985_v51, %v1524_v52 }
 0x689   : > { %2110 = vmatmul.mubr.msk.f32.vlgmr.msra.gmra.mrb[12].mxu1 %vm659_vm2, %v1531_v53 }
 0x75c   : > { %v1612_v3 = vpop.f32.mrb[12].mxu1 }
 0x75d   : > { %v1613_v5 = vadd.f32 %v1986_v2, %v1612_v3  ;;  %v2111_v6 = vpop.f32.mrb[13].mxu1 }
 0x75f   : > { %v1617_v8 = vmul.f32 0.70710677, %v1613_v5  ;;  %v1616_v30 = vmul.f32 0.5, %v1613_v5 }
 0x761   : > { %v1618_v10 = vand.u32 2147483647, %v1617_v8  ;;  %vm1638_vm7 = vcmp.ge.f32.partialorder %v1617_v8, 0.0 }
 0x763   : > { %v1619_v11 = vmul.f32 0.3275911, %v1618_v10  ;;  %v1632_v13 = vsub.f32 0.0, %v1618_v10 }
 0x765   : > { %v1620_v12 = vadd.f32 1.0, %v1619_v11  ;;  %v1633_v4 = vmul.f32 %v1632_v13, %v1618_v10 }
 0x767   : > { %2236 = vrcp.f32 %v1620_v12  ;;  %v1634_v17 = vmul.f32 1.442695, %v1633_v4 }
 0x769   : > { %2238 = vpow2.f32 %v1634_v17 }
 0x771   : > { %v2237_v14 = vpop.eup %2236 }
 0x772   : > { %v1623_v15 = vmul.f32 1.0614054, %v2237_v14 }
 0x773   : > { %v2239_v25 = vpop.eup %2238 }
 0x774   : > { %v1624_v16 = vadd.f32 -1.4531521, %v1623_v15 }
 0x776   : > { %v1625_v18 = vmul.f32 %v2237_v14, %v1624_v16 }
 0x778   : > { %v1626_v19 = vadd.f32 1.4214138, %v1625_v18 }
 0x77a   : > { %v1627_v20 = vmul.f32 %v2237_v14, %v1626_v19 }
 0x77c   : > { %v1628_v21 = vadd.f32 -0.28449672, %v1627_v20 }
 0x77e   : > { %v1629_v22 = vmul.f32 %v2237_v14, %v1628_v21 }
 0x780   : > { %v1630_v23 = vadd.f32 0.2548296, %v1629_v22 }
 0x782   : > { %v1631_v24 = vmul.f32 %v2237_v14, %v1630_v23 }
 0x784   : > { %v1636_v26 = vmul.f32 %v2239_v25, %v1631_v24 }
 0x786   : > { %v1637_v27 = vsub.f32 1.0, %v1636_v26 }
 0x788   : > { %v1639_v28 = vsub.f32 0.0, %v1637_v27 }
 0x78a   : > { %v1640_v29 = vsel %vm1638_vm7, %v1637_v27, %v1639_v28 }
 0x78b   : > { %v1641_v31 = vadd.f32 1.0, %v1640_v29 }
 0x78d   : > { %v1642_v32 = vmul.f32 %v1641_v31, %v1616_v30 }
 0x78f   : > { %2129 = vmatmul.mubr.msk.f32.vlgmr.msra.gmra.mrb[8].mxu0 %vm1658_vm8, %v1642_v32 }
 0x862   : > { %v1728_v34 = vpop.f32.mrb[8].mxu0 }
 0x863   : > { %v1729_v35 = vadd.f32 %v1988_v33, %v1728_v34  ;;  %v2130_v36 = vpop.f32.mrb[9].mxu0 }
 0x865   : > { %v1732_v37 = vadd.f32 %v1729_v35, %v1531_v53 }
 0x867   : > { %v1735_v38 = vsel %vm659_vm2, %v1732_v37, 0.0 }
 0x868   : > { %1736 = vadd.xlane.f32.xlu0 %v1735_v38 }
 0x8f5   : > { %v1737_v39 = vpop.xlane.xlu0 %1736 }
 0x8f6   : > { %v1738_v7 = vmul.f32 0.03125, %v1737_v39 }
 0x8f8   : > { %v1739_v40 = vsub.f32 %v1732_v37, %v1738_v7 }
 0x8fa   : > { %v1740_v41 = vmul.f32 %v1739_v40, %v1739_v40 }
 0x8fc   : > { %v1741_v42 = vsel %vm659_vm2, %v1740_v41, 0.0 }
 0x8fd   : > { %1742 = vadd.xlane.f32.xlu0 %v1741_v42 }
 0x98a   : > { %v1743_v9 = vpop.xlane.xlu0 %1742 }
 0x98b   : > { %v1744_v43 = vmul.f32 0.03125, %v1743_v9 }
 0x98d   : > { %v1745_v44 = vadd.f32 1e-05, %v1744_v43 }
 0x98f   : > { %2240 = vrsqrt.f32 %v1745_v44 }
 0x999   : > { %v2241_v45 = vpop.eup %2240 }
 0x99a   : > { %v1747_v47 = vmul.f32 %v2241_v45, %v1739_v40  ;;  %1766 = sbr.rel (%p1992_p8) target bundleno = 2465 (0x9a1), region = 80 }
 0x99c   : > { %v1754_v49 = vmul.f32 %v1990_v46, %v1747_v47 }
 0x99e   : > { %v1761_v50 = vadd.f32 %v1991_v48, %v1754_v49 }
 0x9a0   : > { %1762 = vst.msk [vmem:[#allocation2] sm:$0xff] %vm659_vm2, %v1761_v50  ;;  %1767 = vst.msk [vmem:[%s2463_s8] sm:$0xff] (!%p1992_p8), %vm659_vm2, %v1761_v50 }
 0x9a1 PF: > { %s2676_s30 = sld [smem:[#allocation7_spill]]  ;;  %s2677_s25 = sld [smem:[#allocation5_spill]] }
 0x9a2   : > { %s2678_s26 = sld [smem:[#allocation6_spill]]  ;;  %s2679_s27 = sld [smem:[#allocation8_spill]] }
 0x9a3   : > { %s2680_s28 = sld [smem:[#allocation9_spill]] }
 0x9a7   : > { %s23_s29 = sadd.s32 1, %s2676_s30  }
 0x9a8   : > { %p20_p9 = scmp.ge.s32.totalorder %s23_s29, 6  }
 0x9aa   :  { %22 = sbr.rel (!%p20_p9) target bundleno = 8 (0x8), region = 146 }

</bundles_post_ra>
